<compile_context>
chip_gen: v7x
topology: tpu7x:2x2x1
jax: 0.10.0
libtpu: 0.0.40
codegen_flags: <defaults>
</compile_context>

<pallas_src>
import math

import jax
import jax.numpy as jnp
from jax.experimental import pallas as pl
from jax.experimental.pallas import tpu as pltpu

# ---- small, module-consistent shapes -----------------------------------
B, S, H = 2, 8, 128          # batch, seq, hidden_size (stand-in for 768)
NH, HD = 4, 32               # heads, head dim (NH * HD == H)
FF = 256                     # FFN intermediate size
V = 100                      # vocab size (synthetic)
NUM_CATS = 8                 # num_cats
HP = 128                     # lane-padded width for head intermediates / logits
NVEC = 16                    # rows in the packed bias/layernorm slab
LN_EPS = 1e-12               # BERT layernorm eps
NEG_INF = -1e9

# column offsets inside the packed (H, WCOLS) weight slab
C_QKV = 0                    # (H, 3H)  fused wq|wk|wv (wq pre-scaled by 1/sqrt(HD))
C_WO = C_QKV + 3 * H         # (H, H)   attention output proj
C_FF1 = C_WO + H             # (H, FF)  FFN up-proj
C_HW1 = C_FF1 + FF           # (H, 128) head layer1
C_HW2 = C_HW1 + HP           # (128,128) head layer2 (zero-padded from 128x64)
C_HW3 = C_HW2 + HP           # (128,128) head outlayer (zero-padded from 64x8)
WCOLS = C_HW3 + HP           # 1152

# row offsets inside the packed (NVEC, 2H) vector slab
R_BQ, R_BK, R_BV, R_BO = 0, 1, 2, 3
R_LN1G, R_LN1B = 4, 5
R_BFF1 = 6                   # full 256 lanes
R_BFF2, R_LN2G, R_LN2B = 7, 8, 9
R_HB1, R_HB2, R_HB3 = 10, 11, 12


def _layernorm(x, g, b):
    mu = jnp.mean(x, axis=-1, keepdims=True)
    var = jnp.mean((x - mu) ** 2, axis=-1, keepdims=True)
    return (x - mu) * jax.lax.rsqrt(var + LN_EPS) * g + b


# ------------------------------------------------------------------------
# Fused kernel: one sequence (S rows) per grid step.
# ------------------------------------------------------------------------
def fused_kernel(x_ref, bias_ref, selm_ref, w_ref, wff2_ref, vec_ref, o_ref):
    x = x_ref[...]                                   # (S, H)
    vec = vec_ref[...]                               # (NVEC, 2H) packed small vectors
    selm = selm_ref[...]                             # (NH*S, H) static head-select 0/1

    # ---- fused QKV projection: one weight push, 3H output lanes ----
    qkv = jnp.dot(x, w_ref[:, C_QKV:C_QKV + 3 * H],
                  preferred_element_type=jnp.float32)          # (S, 3H)
    q = qkv[:, 0:H] + vec[R_BQ:R_BQ + 1, 0:H]        # 1/sqrt(HD) folded into wq/bq
    k = qkv[:, H:2 * H] + vec[R_BK:R_BK + 1, 0:H]
    v = qkv[:, 2 * H:3 * H] + vec[R_BV:R_BV + 1, 0:H]

    # ---- multi-head attention, strictly 2-D (no head reshape / 3-D einsum) ----
    # K_sel / V_sel are head-block-diagonal (NH*S, H): row h*S+j holds key/value j
    # restricted to head h's HD lanes.
    k_sel = jnp.tile(k, (NH, 1)) * selm              # (NH*S, H)
    v_sel = jnp.tile(v, (NH, 1)) * selm              # (NH*S, H)

    # scores[qi, h*S+j] = <q[qi, head h lanes], k[j, head h lanes]>
    s = jax.lax.dot_general(q, k_sel, (((1,), (1,)), ((), ())),
                            preferred_element_type=jnp.float32)  # (S, NH*S)
    s = s + bias_ref[...]                            # key-padding bias (tiled per head)
    # row-global max is a per-(row, head) constant -> exact per-head softmax
    s = s - jnp.max(s, axis=-1, keepdims=True)
    p = jnp.exp(s)                                   # (S, NH*S)

    ctx = jnp.dot(p, v_sel, preferred_element_type=jnp.float32)   # (S, H) unnormalised
    den = jnp.dot(p, selm, preferred_element_type=jnp.float32)    # per-head sums, bcast to HD lanes
    ctx = ctx * pl.reciprocal(den, approx=True)

    attn = jnp.dot(ctx, w_ref[:, C_WO:C_WO + H],
                   preferred_element_type=jnp.float32) + vec[R_BO:R_BO + 1, 0:H]
    x1 = _layernorm(x + attn, vec[R_LN1G:R_LN1G + 1, 0:H], vec[R_LN1B:R_LN1B + 1, 0:H])

    # ---- FFN ----
    ff = jnp.dot(x1, w_ref[:, C_FF1:C_FF1 + FF],
                 preferred_element_type=jnp.float32) + vec[R_BFF1:R_BFF1 + 1, :]
    ff = jax.nn.gelu(ff, approximate=True)
    ff = jnp.dot(ff, wff2_ref[...],
                 preferred_element_type=jnp.float32) + vec[R_BFF2:R_BFF2 + 1, 0:H]
    hidden = _layernorm(x1 + ff, vec[R_LN2G:R_LN2G + 1, 0:H], vec[R_LN2B:R_LN2B + 1, 0:H])

    # ---- classifier head on all S rows (CLS row picked outside the kernel) ----
    h1 = jnp.maximum(
        jnp.dot(hidden, w_ref[:, C_HW1:C_HW1 + HP],
                preferred_element_type=jnp.float32) + vec[R_HB1:R_HB1 + 1, 0:H], 0.0)
    # dropout(p=0.3): identity in eval mode
    h2 = jnp.maximum(
        jnp.dot(h1, w_ref[:, C_HW2:C_HW2 + HP],
                preferred_element_type=jnp.float32) + vec[R_HB2:R_HB2 + 1, 0:H], 0.0)
    # dropout(p=0.3): identity in eval mode
    o_ref[...] = (jnp.dot(h2, w_ref[:, C_HW3:C_HW3 + HP],
                          preferred_element_type=jnp.float32)
                  + vec[R_HB3:R_HB3 + 1, 0:H])


def run_fused(xf, bias, kparams):
    sel_mask, w_slab, wff2, vec = kparams
    in_specs = [
        pl.BlockSpec((S, H), lambda b: (b, 0)),          # token rows of sequence b
        pl.BlockSpec((S, NH * S), lambda b: (b, 0)),     # attention bias for sequence b
        pl.BlockSpec((NH * S, H), lambda b: (0, 0)),     # static head-select mask (resident)
        pl.BlockSpec((H, WCOLS), lambda b: (0, 0)),      # packed 128-row weights (resident)
        pl.BlockSpec((FF, H), lambda b: (0, 0)),         # FFN down-proj (resident)
        pl.BlockSpec((NVEC, 2 * H), lambda b: (0, 0)),   # packed bias/layernorm slab (resident)
    ]
    return pl.pallas_call(
        fused_kernel,
        grid=(B,),
        in_specs=in_specs,
        out_specs=pl.BlockSpec((S, HP), lambda b: (b, 0)),
        out_shape=jax.ShapeDtypeStruct((B * S, HP), jnp.float32),
        compiler_params=pltpu.CompilerParams(
            dimension_semantics=("parallel",)),
    )(xf, bias, sel_mask, w_slab, wff2, vec)


# ------------------------------------------------------------------------
# Parameter init (deterministic), packing, and full forward.
# ------------------------------------------------------------------------
def init_params(key):
    ks = jax.random.split(key, 16)
    n = lambda k, s: (0.02 * jax.random.normal(k, s)).astype(jnp.float32)
    return {
        # embeddings
        "word_emb": n(ks[0], (V, H)),
        "pos_emb": n(ks[1], (S, H)),
        "emb_g": jnp.ones((1, H), jnp.float32),
        "emb_b": jnp.zeros((1, H), jnp.float32),
        # encoder layer
        "wq": n(ks[2], (H, H)), "bq": jnp.zeros((1, H), jnp.float32),
        "wk": n(ks[3], (H, H)), "bk": jnp.zeros((1, H), jnp.float32),
        "wv": n(ks[4], (H, H)), "bv": jnp.zeros((1, H), jnp.float32),
        "wo": n(ks[5], (H, H)), "bo": jnp.zeros((1, H), jnp.float32),
        "ln1_g": jnp.ones((1, H), jnp.float32), "ln1_b": jnp.zeros((1, H), jnp.float32),
        "wff1": n(ks[6], (H, FF)), "bff1": jnp.zeros((1, FF), jnp.float32),
        "wff2": n(ks[7], (FF, H)), "bff2": jnp.zeros((1, H), jnp.float32),
        "ln2_g": jnp.ones((1, H), jnp.float32), "ln2_b": jnp.zeros((1, H), jnp.float32),
        # classifier head (layer1: H->128, layer2: 128->64, outlayer: 64->num_cats)
        "h_w1": n(ks[8], (H, 128)), "h_b1": jnp.zeros((1, 128), jnp.float32),
        "h_w2": n(ks[9], (128, 64)), "h_b2": jnp.zeros((1, 64), jnp.float32),
        "h_w3": n(ks[10], (64, NUM_CATS)), "h_b3": jnp.zeros((1, NUM_CATS), jnp.float32),
    }


def pack_params(p):
    """One-time packing of kernel operands (weights, small vectors, static masks)."""
    scale = 1.0 / math.sqrt(HD)
    # fused QKV weight with the softmax scale folded into wq (and bq below)
    wqkv = jnp.concatenate([p["wq"] * scale, p["wk"], p["wv"]], axis=1)      # (H, 3H)
    hw2p = jnp.zeros((HP, HP), jnp.float32).at[:, :64].set(p["h_w2"])
    hw3p = jnp.zeros((HP, HP), jnp.float32).at[:64, :NUM_CATS].set(p["h_w3"])
    w_slab = jnp.concatenate([wqkv, p["wo"], p["wff1"], p["h_w1"], hw2p, hw3p],
                             axis=1)                                         # (H, 1152)

    hb2p = jnp.zeros((1, H), jnp.float32).at[:, :64].set(p["h_b2"])
    hb3p = jnp.zeros((1, H), jnp.float32).at[:, :NUM_CATS].set(p["h_b3"])
    z = jnp.zeros((1, H), jnp.float32)
    pad = lambda vrow: jnp.concatenate([vrow, z], axis=1)                    # -> (1, 2H)
    rows = [pad(p["bq"] * scale), pad(p["bk"]), pad(p["bv"]), pad(p["bo"]),
            pad(p["ln1_g"]), pad(p["ln1_b"]),
            p["bff1"],                                                       # (1, 2H)
            pad(p["bff2"]), pad(p["ln2_g"]), pad(p["ln2_b"]),
            pad(p["h_b1"]), pad(hb2p), pad(hb3p)]
    rows += [jnp.zeros((1, 2 * H), jnp.float32)] * (NVEC - len(rows))
    vec = jnp.concatenate(rows, axis=0)                                      # (NVEC, 2H)

    # static head-block-diagonal selector: row h*S+j picks head h's HD lanes
    sel_mask = jnp.kron(jnp.eye(NH, dtype=jnp.float32),
                        jnp.ones((S, HD), jnp.float32))                      # (NH*S, H)
    return sel_mask, w_slab, p["wff2"], vec


def forward(input_ids, attention_mask, p, kparams):
    # Embedding lookup + layernorm (plain-JAX glue: gather has no clean tile form here)
    x = p["word_emb"][input_ids] + p["pos_emb"][None, :, :]
    x = _layernorm(x, p["emb_g"][0], p["emb_b"][0]).astype(jnp.float32)      # (B, S, H)
    xf = x.reshape(B * S, H)

    # Key-padding additive bias, broadcast over queries and tiled per head on lanes.
    key_bias = (1.0 - attention_mask.astype(jnp.float32)) * NEG_INF          # (B, S)
    bias = jnp.tile(key_bias[:, None, :], (1, S, NH)).reshape(B * S, NH * S)

    out = run_fused(xf, bias, kparams)                                       # (B*S, HP)
    return out.reshape(B, S, HP)[:, 0, :NUM_CATS]                            # CLS logits


# ------------------------------------------------------------------------
# Pure-JAX reference (same math) for validation.
# ------------------------------------------------------------------------
def reference_forward(input_ids, attention_mask, p):
    x = p["word_emb"][input_ids] + p["pos_emb"][None, :, :]
    x = _layernorm(x, p["emb_g"][0], p["emb_b"][0])
    mask = attention_mask.astype(jnp.float32)[:, None, None, :]              # (B,1,1,S)
    bias = (1.0 - mask) * NEG_INF

    q = (x @ p["wq"] + p["bq"]).reshape(B, S, NH, HD)
    k = (x @ p["wk"] + p["bk"]).reshape(B, S, NH, HD)
    v = (x @ p["wv"] + p["bv"]).reshape(B, S, NH, HD)
    s = jnp.einsum("bqnd,bknd->bnqk", q, k) / math.sqrt(HD) + bias
    a = jax.nn.softmax(s, axis=-1)
    ctx = jnp.einsum("bnqk,bknd->bqnd", a, v).reshape(B, S, H)
    x1 = _layernorm(x + ctx @ p["wo"] + p["bo"], p["ln1_g"][0], p["ln1_b"][0])
    ff = jax.nn.gelu(x1 @ p["wff1"] + p["bff1"], approximate=True) @ p["wff2"] + p["bff2"]
    hidden = _layernorm(x1 + ff, p["ln2_g"][0], p["ln2_b"][0])

    cls = hidden[:, 0, :]
    h1 = jnp.maximum(cls @ p["h_w1"] + p["h_b1"], 0.0)
    h2 = jnp.maximum(h1 @ p["h_w2"] + p["h_b2"], 0.0)
    return h2 @ p["h_w3"] + p["h_b3"]


if __name__ == "__main__":
    key = jax.random.PRNGKey(0)
    k_param, k_ids = jax.random.split(key)
    params = init_params(k_param)
    kparams = pack_params(params)                                            # one-time packing

    input_ids = jax.random.randint(k_ids, (B, S), 0, V, dtype=jnp.int32)
    attention_mask = jnp.ones((B, S), dtype=jnp.int32).at[1, 6:].set(0)      # pad tail of seq 1

    logits = jax.block_until_ready(forward(input_ids, attention_mask, params, kparams))
    ref = jax.block_until_ready(reference_forward(input_ids, attention_mask, params))

    assert logits.shape == (B, NUM_CATS), logits.shape
    assert jnp.allclose(logits, ref, atol=2e-3, rtol=2e-3), (
        f"max abs diff {jnp.max(jnp.abs(logits - ref))}")
    print("KERNEL_OK")
</pallas_src>

<mosaic_0001>
module attributes {stable_mosaic.version = 11 : i64} {
  func.func @fused_kernel(%arg0: i32, %arg1: memref<8x128xf32, #tpu.memory_space<vmem>>, %arg2: memref<8x32xf32, #tpu.memory_space<vmem>>, %arg3: memref<32x128xf32, #tpu.memory_space<vmem>>, %arg4: memref<128x1152xf32, #tpu.memory_space<vmem>>, %arg5: memref<256x128xf32, #tpu.memory_space<vmem>>, %arg6: memref<16x256xf32, #tpu.memory_space<vmem>>, %arg7: memref<8x128xf32, #tpu.memory_space<vmem>>) attributes {dimension_semantics = [#tpu.dimension_semantics<parallel>], iteration_bounds = array<i64: 2>, scalar_prefetch = 0 : i64, scratch_operands = 0 : i64, tpu.core_type = #tpu.core_type<tc>, window_params = [{transform_indices = @transform_0, window_bounds = array<i64: 8, 128>}, {transform_indices = @transform_1, window_bounds = array<i64: 8, 32>}, {pipeline_mode = #tpu.pipeline_mode<synchronous>, transform_indices = @transform_2, window_bounds = array<i64: 32, 128>}, {pipeline_mode = #tpu.pipeline_mode<synchronous>, transform_indices = @transform_3, window_bounds = array<i64: 128, 1152>}, {pipeline_mode = #tpu.pipeline_mode<synchronous>, transform_indices = @transform_4, window_bounds = array<i64: 256, 128>}, {pipeline_mode = #tpu.pipeline_mode<synchronous>, transform_indices = @transform_5, window_bounds = array<i64: 16, 256>}, {transform_indices = @transform_6, window_bounds = array<i64: 8, 128>}]} {
    %c0 = arith.constant 0 : index
    %c0_0 = arith.constant 0 : index
    %0 = vector.load %arg1[%c0, %c0_0] : memref<8x128xf32, #tpu.memory_space<vmem>>, vector<8x128xf32>
    %c0_1 = arith.constant 0 : index
    %c0_2 = arith.constant 0 : index
    %1 = vector.load %arg6[%c0_1, %c0_2] : memref<16x256xf32, #tpu.memory_space<vmem>>, vector<16x256xf32>
    %c0_3 = arith.constant 0 : index
    %c0_4 = arith.constant 0 : index
    %2 = vector.load %arg3[%c0_3, %c0_4] : memref<32x128xf32, #tpu.memory_space<vmem>>, vector<32x128xf32>
    %c0_5 = arith.constant 0 : index
    %c0_6 = arith.constant 0 : index
    %3 = vector.load %arg4[%c0_5, %c0_6] : memref<128x1152xf32, #tpu.memory_space<vmem>>, vector<128x384xf32>
    %cst = arith.constant dense<0.000000e+00> : vector<8x384xf32>
    %4 = tpu.matmul %0, %3, %cst {dimension_numbers = #tpu.dot_dimension_numbers<[1], [0], [0], [1], [0, 0, 1, 1], [], []>} : vector<8x128xf32>, vector<128x384xf32>, vector<8x384xf32> -> vector<8x384xf32>
    %5 = vector.extract_strided_slice %4 {offsets = [0, 0], sizes = [8, 128], strides = [1, 1]} : vector<8x384xf32> to vector<8x128xf32>
    %6 = vector.extract_strided_slice %1 {offsets = [0, 0], sizes = [1, 128], strides = [1, 1]} : vector<16x256xf32> to vector<1x128xf32>
    %7 = vector.broadcast %6 : vector<1x128xf32> to vector<8x128xf32>
    %8 = arith.addf %5, %7 : vector<8x128xf32>
    %9 = vector.extract_strided_slice %4 {offsets = [0, 128], sizes = [8, 128], strides = [1, 1]} : vector<8x384xf32> to vector<8x128xf32>
    %10 = vector.extract_strided_slice %1 {offsets = [1, 0], sizes = [1, 128], strides = [1, 1]} : vector<16x256xf32> to vector<1x128xf32>
    %11 = vector.broadcast %10 : vector<1x128xf32> to vector<8x128xf32>
    %12 = arith.addf %9, %11 : vector<8x128xf32>
    %13 = vector.extract_strided_slice %4 {offsets = [0, 256], sizes = [8, 128], strides = [1, 1]} : vector<8x384xf32> to vector<8x128xf32>
    %14 = vector.extract_strided_slice %1 {offsets = [2, 0], sizes = [1, 128], strides = [1, 1]} : vector<16x256xf32> to vector<1x128xf32>
    %15 = vector.broadcast %14 : vector<1x128xf32> to vector<8x128xf32>
    %16 = arith.addf %13, %15 : vector<8x128xf32>
    %17 = tpu.concatenate %12, %12, %12, %12 in 0 : vector<8x128xf32>, vector<8x128xf32>, vector<8x128xf32>, vector<8x128xf32> -> vector<32x128xf32>
    %18 = arith.mulf %17, %2 : vector<32x128xf32>
    %19 = tpu.concatenate %16, %16, %16, %16 in 0 : vector<8x128xf32>, vector<8x128xf32>, vector<8x128xf32>, vector<8x128xf32> -> vector<32x128xf32>
    %20 = arith.mulf %19, %2 : vector<32x128xf32>
    %cst_7 = arith.constant dense<0.000000e+00> : vector<8x32xf32>
    %21 = tpu.matmul %8, %18, %cst_7 {dimension_numbers = #tpu.dot_dimension_numbers<[1], [1], [0], [0], [0, 0, 1, 0], [], []>} : vector<8x128xf32>, vector<32x128xf32>, vector<8x32xf32> -> vector<8x32xf32>
    %c0_8 = arith.constant 0 : index
    %c0_9 = arith.constant 0 : index
    %22 = vector.load %arg2[%c0_8, %c0_9] : memref<8x32xf32, #tpu.memory_space<vmem>>, vector<8x32xf32>
    %23 = arith.addf %21, %22 : vector<8x32xf32>
    %cst_10 = arith.constant dense<0xFF800000> : vector<8xf32>
    %24 = vector.multi_reduction <maximumf>, %23, %cst_10 [1] : vector<8x32xf32> to vector<8xf32>
    %25 = vector.shape_cast %24 : vector<8xf32> to vector<8x1xf32>
    %26 = vector.broadcast %25 : vector<8x1xf32> to vector<8x32xf32>
    %27 = arith.subf %23, %26 : vector<8x32xf32>
    %28 = math.exp %27 : vector<8x32xf32>
    %cst_11 = arith.constant dense<0.000000e+00> : vector<8x128xf32>
    %29 = tpu.matmul %28, %20, %cst_11 {dimension_numbers = #tpu.dot_dimension_numbers<[1], [0], [0], [1], [0, 0, 1, 1], [], []>} : vector<8x32xf32>, vector<32x128xf32>, vector<8x128xf32> -> vector<8x128xf32>
    %cst_12 = arith.constant dense<0.000000e+00> : vector<8x128xf32>
    %30 = tpu.matmul %28, %2, %cst_12 {dimension_numbers = #tpu.dot_dimension_numbers<[1], [0], [0], [1], [0, 0, 1, 1], [], []>} : vector<8x32xf32>, vector<32x128xf32>, vector<8x128xf32> -> vector<8x128xf32>
    %31 = tpu.reciprocal %30 {approx = true} : vector<8x128xf32> -> vector<8x128xf32>
    %32 = arith.mulf %29, %31 : vector<8x128xf32>
    %c0_13 = arith.constant 0 : index
    %c384 = arith.constant 384 : index
    %33 = vector.load %arg4[%c0_13, %c384] : memref<128x1152xf32, #tpu.memory_space<vmem>>, vector<128x128xf32>
    %cst_14 = arith.constant dense<0.000000e+00> : vector<8x128xf32>
    %34 = tpu.matmul %32, %33, %cst_14 {dimension_numbers = #tpu.dot_dimension_numbers<[1], [0], [0], [1], [0, 0, 1, 1], [], []>} : vector<8x128xf32>, vector<128x128xf32>, vector<8x128xf32> -> vector<8x128xf32>
    %35 = vector.extract_strided_slice %1 {offsets = [3, 0], sizes = [1, 128], strides = [1, 1]} : vector<16x256xf32> to vector<1x128xf32>
    %36 = vector.broadcast %35 : vector<1x128xf32> to vector<8x128xf32>
    %37 = arith.addf %34, %36 : vector<8x128xf32>
    %38 = arith.addf %0, %37 : vector<8x128xf32>
    %39 = vector.extract_strided_slice %1 {offsets = [4, 0], sizes = [1, 128], strides = [1, 1]} : vector<16x256xf32> to vector<1x128xf32>
    %40 = vector.extract_strided_slice %1 {offsets = [5, 0], sizes = [1, 128], strides = [1, 1]} : vector<16x256xf32> to vector<1x128xf32>
    %cst_15 = arith.constant dense<0.000000e+00> : vector<8xf32>
    %41 = vector.multi_reduction <add>, %38, %cst_15 [1] : vector<8x128xf32> to vector<8xf32>
    %42 = vector.shape_cast %41 : vector<8xf32> to vector<8x1xf32>
    %cst_16 = arith.constant 1.280000e+02 : f32
    %43 = vector.broadcast %cst_16 : f32 to vector<8x1xf32>
    %44 = arith.divf %42, %43 : vector<8x1xf32>
    %45 = vector.broadcast %44 : vector<8x1xf32> to vector<8x128xf32>
    %46 = arith.subf %38, %45 : vector<8x128xf32>
    %47 = arith.mulf %46, %46 : vector<8x128xf32>
    %cst_17 = arith.constant dense<0.000000e+00> : vector<8xf32>
    %48 = vector.multi_reduction <add>, %47, %cst_17 [1] : vector<8x128xf32> to vector<8xf32>
    %49 = vector.shape_cast %48 : vector<8xf32> to vector<8x1xf32>
    %cst_18 = arith.constant 1.280000e+02 : f32
    %50 = vector.broadcast %cst_18 : f32 to vector<8x1xf32>
    %51 = arith.divf %49, %50 : vector<8x1xf32>
    %52 = vector.broadcast %44 : vector<8x1xf32> to vector<8x128xf32>
    %53 = arith.subf %38, %52 : vector<8x128xf32>
    %cst_19 = arith.constant 9.99999996E-13 : f32
    %54 = vector.broadcast %cst_19 : f32 to vector<8x1xf32>
    %55 = arith.addf %51, %54 : vector<8x1xf32>
    %56 = math.rsqrt %55 : vector<8x1xf32>
    %57 = vector.broadcast %56 : vector<8x1xf32> to vector<8x128xf32>
    %58 = arith.mulf %53, %57 : vector<8x128xf32>
    %59 = vector.broadcast %39 : vector<1x128xf32> to vector<8x128xf32>
    %60 = arith.mulf %58, %59 : vector<8x128xf32>
    %61 = vector.broadcast %40 : vector<1x128xf32> to vector<8x128xf32>
    %62 = arith.addf %60, %61 : vector<8x128xf32>
    %c0_20 = arith.constant 0 : index
    %c512 = arith.constant 512 : index
    %63 = vector.load %arg4[%c0_20, %c512] : memref<128x1152xf32, #tpu.memory_space<vmem>>, vector<128x256xf32>
    %cst_21 = arith.constant dense<0.000000e+00> : vector<8x256xf32>
    %64 = tpu.matmul %62, %63, %cst_21 {dimension_numbers = #tpu.dot_dimension_numbers<[1], [0], [0], [1], [0, 0, 1, 1], [], []>} : vector<8x128xf32>, vector<128x256xf32>, vector<8x256xf32> -> vector<8x256xf32>
    %65 = vector.extract_strided_slice %1 {offsets = [6, 0], sizes = [1, 256], strides = [1, 1]} : vector<16x256xf32> to vector<1x256xf32>
    %66 = vector.broadcast %65 : vector<1x256xf32> to vector<8x256xf32>
    %67 = arith.addf %64, %66 : vector<8x256xf32>
    %68 = arith.mulf %67, %67 : vector<8x256xf32>
    %69 = arith.mulf %67, %68 : vector<8x256xf32>
    %cst_22 = arith.constant 4.471500e-02 : f32
    %70 = vector.broadcast %cst_22 : f32 to vector<8x256xf32>
    %71 = arith.mulf %70, %69 : vector<8x256xf32>
    %72 = arith.addf %67, %71 : vector<8x256xf32>
    %cst_23 = arith.constant 0.797884583 : f32
    %73 = vector.broadcast %cst_23 : f32 to vector<8x256xf32>
    %74 = arith.mulf %73, %72 : vector<8x256xf32>
    %75 = math.tanh %74 : vector<8x256xf32>
    %cst_24 = arith.constant 1.000000e+00 : f32
    %76 = vector.broadcast %cst_24 : f32 to vector<8x256xf32>
    %77 = arith.addf %76, %75 : vector<8x256xf32>
    %cst_25 = arith.constant 5.000000e-01 : f32
    %78 = vector.broadcast %cst_25 : f32 to vector<8x256xf32>
    %79 = arith.mulf %78, %77 : vector<8x256xf32>
    %80 = arith.mulf %67, %79 : vector<8x256xf32>
    %c0_26 = arith.constant 0 : index
    %c0_27 = arith.constant 0 : index
    %81 = vector.load %arg5[%c0_26, %c0_27] : memref<256x128xf32, #tpu.memory_space<vmem>>, vector<256x128xf32>
    %cst_28 = arith.constant dense<0.000000e+00> : vector<8x128xf32>
    %82 = tpu.matmul %80, %81, %cst_28 {dimension_numbers = #tpu.dot_dimension_numbers<[1], [0], [0], [1], [0, 0, 1, 1], [], []>} : vector<8x256xf32>, vector<256x128xf32>, vector<8x128xf32> -> vector<8x128xf32>
    %83 = vector.extract_strided_slice %1 {offsets = [7, 0], sizes = [1, 128], strides = [1, 1]} : vector<16x256xf32> to vector<1x128xf32>
    %84 = vector.broadcast %83 : vector<1x128xf32> to vector<8x128xf32>
    %85 = arith.addf %82, %84 : vector<8x128xf32>
    %86 = arith.addf %62, %85 : vector<8x128xf32>
    %87 = vector.extract_strided_slice %1 {offsets = [8, 0], sizes = [1, 128], strides = [1, 1]} : vector<16x256xf32> to vector<1x128xf32>
    %88 = vector.extract_strided_slice %1 {offsets = [9, 0], sizes = [1, 128], strides = [1, 1]} : vector<16x256xf32> to vector<1x128xf32>
    %cst_29 = arith.constant dense<0.000000e+00> : vector<8xf32>
    %89 = vector.multi_reduction <add>, %86, %cst_29 [1] : vector<8x128xf32> to vector<8xf32>
    %90 = vector.shape_cast %89 : vector<8xf32> to vector<8x1xf32>
    %cst_30 = arith.constant 1.280000e+02 : f32
    %91 = vector.broadcast %cst_30 : f32 to vector<8x1xf32>
    %92 = arith.divf %90, %91 : vector<8x1xf32>
    %93 = vector.broadcast %92 : vector<8x1xf32> to vector<8x128xf32>
    %94 = arith.subf %86, %93 : vector<8x128xf32>
    %95 = arith.mulf %94, %94 : vector<8x128xf32>
    %cst_31 = arith.constant dense<0.000000e+00> : vector<8xf32>
    %96 = vector.multi_reduction <add>, %95, %cst_31 [1] : vector<8x128xf32> to vector<8xf32>
    %97 = vector.shape_cast %96 : vector<8xf32> to vector<8x1xf32>
    %cst_32 = arith.constant 1.280000e+02 : f32
    %98 = vector.broadcast %cst_32 : f32 to vector<8x1xf32>
    %99 = arith.divf %97, %98 : vector<8x1xf32>
    %100 = vector.broadcast %92 : vector<8x1xf32> to vector<8x128xf32>
    %101 = arith.subf %86, %100 : vector<8x128xf32>
    %cst_33 = arith.constant 9.99999996E-13 : f32
    %102 = vector.broadcast %cst_33 : f32 to vector<8x1xf32>
    %103 = arith.addf %99, %102 : vector<8x1xf32>
    %104 = math.rsqrt %103 : vector<8x1xf32>
    %105 = vector.broadcast %104 : vector<8x1xf32> to vector<8x128xf32>
    %106 = arith.mulf %101, %105 : vector<8x128xf32>
    %107 = vector.broadcast %87 : vector<1x128xf32> to vector<8x128xf32>
    %108 = arith.mulf %106, %107 : vector<8x128xf32>
    %109 = vector.broadcast %88 : vector<1x128xf32> to vector<8x128xf32>
    %110 = arith.addf %108, %109 : vector<8x128xf32>
    %c0_34 = arith.constant 0 : index
    %c768 = arith.constant 768 : index
    %111 = vector.load %arg4[%c0_34, %c768] : memref<128x1152xf32, #tpu.memory_space<vmem>>, vector<128x128xf32>
    %cst_35 = arith.constant dense<0.000000e+00> : vector<8x128xf32>
    %112 = tpu.matmul %110, %111, %cst_35 {dimension_numbers = #tpu.dot_dimension_numbers<[1], [0], [0], [1], [0, 0, 1, 1], [], []>} : vector<8x128xf32>, vector<128x128xf32>, vector<8x128xf32> -> vector<8x128xf32>
    %113 = vector.extract_strided_slice %1 {offsets = [10, 0], sizes = [1, 128], strides = [1, 1]} : vector<16x256xf32> to vector<1x128xf32>
    %114 = vector.broadcast %113 : vector<1x128xf32> to vector<8x128xf32>
    %115 = arith.addf %112, %114 : vector<8x128xf32>
    %cst_36 = arith.constant 0.000000e+00 : f32
    %116 = vector.broadcast %cst_36 : f32 to vector<8x128xf32>
    %117 = arith.maximumf %115, %116 : vector<8x128xf32>
    %c0_37 = arith.constant 0 : index
    %c896 = arith.constant 896 : index
    %118 = vector.load %arg4[%c0_37, %c896] : memref<128x1152xf32, #tpu.memory_space<vmem>>, vector<128x128xf32>
    %cst_38 = arith.constant dense<0.000000e+00> : vector<8x128xf32>
    %119 = tpu.matmul %117, %118, %cst_38 {dimension_numbers = #tpu.dot_dimension_numbers<[1], [0], [0], [1], [0, 0, 1, 1], [], []>} : vector<8x128xf32>, vector<128x128xf32>, vector<8x128xf32> -> vector<8x128xf32>
    %120 = vector.extract_strided_slice %1 {offsets = [11, 0], sizes = [1, 128], strides = [1, 1]} : vector<16x256xf32> to vector<1x128xf32>
    %121 = vector.broadcast %120 : vector<1x128xf32> to vector<8x128xf32>
    %122 = arith.addf %119, %121 : vector<8x128xf32>
    %cst_39 = arith.constant 0.000000e+00 : f32
    %123 = vector.broadcast %cst_39 : f32 to vector<8x128xf32>
    %124 = arith.maximumf %122, %123 : vector<8x128xf32>
    %c0_40 = arith.constant 0 : index
    %c1024 = arith.constant 1024 : index
    %125 = vector.load %arg4[%c0_40, %c1024] : memref<128x1152xf32, #tpu.memory_space<vmem>>, vector<128x128xf32>
    %cst_41 = arith.constant dense<0.000000e+00> : vector<8x128xf32>
    %126 = tpu.matmul %124, %125, %cst_41 {dimension_numbers = #tpu.dot_dimension_numbers<[1], [0], [0], [1], [0, 0, 1, 1], [], []>} : vector<8x128xf32>, vector<128x128xf32>, vector<8x128xf32> -> vector<8x128xf32>
    %127 = vector.extract_strided_slice %1 {offsets = [12, 0], sizes = [1, 128], strides = [1, 1]} : vector<16x256xf32> to vector<1x128xf32>
    %128 = vector.broadcast %127 : vector<1x128xf32> to vector<8x128xf32>
    %129 = arith.addf %126, %128 : vector<8x128xf32>
    %c0_42 = arith.constant 0 : index
    %c0_43 = arith.constant 0 : index
    %130 = vector.load %arg7[%c0_42, %c0_43] : memref<8x128xf32, #tpu.memory_space<vmem>>, vector<8x128xf32>
    tpu.vector_store %arg7[%c0_42, %c0_43], %129 {strides = array<i32>} : memref<8x128xf32, #tpu.memory_space<vmem>>, vector<8x128xf32>,
    return
  }
  func.func @transform_0(%arg0: i32) -> (i32, i32) {
    %c0_i32 = arith.constant 0 : i32
    %c0_i32_0 = arith.constant 0 : i32
    return %arg0, %c0_i32 : i32, i32
  }
  func.func @transform_1(%arg0: i32) -> (i32, i32) {
    %c0_i32 = arith.constant 0 : i32
    %c0_i32_0 = arith.constant 0 : i32
    return %arg0, %c0_i32 : i32, i32
  }
  func.func @transform_2(%arg0: i32) -> (i32, i32) {
    %c0_i32 = arith.constant 0 : i32
    %c0_i32_0 = arith.constant 0 : i32
    %c0_i32_1 = arith.constant 0 : i32
    return %c0_i32, %c0_i32_0 : i32, i32
  }
  func.func @transform_3(%arg0: i32) -> (i32, i32) {
    %c0_i32 = arith.constant 0 : i32
    %c0_i32_0 = arith.constant 0 : i32
    %c0_i32_1 = arith.constant 0 : i32
    return %c0_i32, %c0_i32_0 : i32, i32
  }
  func.func @transform_4(%arg0: i32) -> (i32, i32) {
    %c0_i32 = arith.constant 0 : i32
    %c0_i32_0 = arith.constant 0 : i32
    %c0_i32_1 = arith.constant 0 : i32
    return %c0_i32, %c0_i32_0 : i32, i32
  }
  func.func @transform_5(%arg0: i32) -> (i32, i32) {
    %c0_i32 = arith.constant 0 : i32
    %c0_i32_0 = arith.constant 0 : i32
    %c0_i32_1 = arith.constant 0 : i32
    return %c0_i32, %c0_i32_0 : i32, i32
  }
  func.func @transform_6(%arg0: i32) -> (i32, i32) {
    %c0_i32 = arith.constant 0 : i32
    %c0_i32_0 = arith.constant 0 : i32
    return %arg0, %c0_i32 : i32, i32
  }
}

</mosaic_0001>

<bundles_post_ra>
// kernel: tpu_custom_call.1
= control target key start
LH: loop header
LB: loop body
LE: loop exit
PB: predicated region body
PF: predicated region fallthrough
CT: control target
= control target key end

     0   :  { %s3084_s0 = inlined_call_operand.hbm [shape: f32[16,128], index: 0, kind: input, shape index: {}]   ;;  %s3085_s1 = inlined_call_operand.hbm [shape: f32[16,32], index: 1, kind: input, shape index: {}]   ;;  %s3086_s2 = inlined_call_operand.hbm [shape: f32[32,128], index: 2, kind: input, shape index: {}]   ;;  %s3087_s3 = inlined_call_operand.hbm [shape: f32[128,1152], index: 3, kind: input, shape index: {}]   ;;  %s3088_s4 = inlined_call_operand.hbm [shape: f32[256,128], index: 4, kind: input, shape index: {}]   ;;  %s3089_s5 = inlined_call_operand.hbm [shape: f32[16,256], index: 5, kind: input, shape index: {}]   ;;  %s3090_s6 = inlined_call_operand.hbm [shape: f32[16,128], index: 6, kind: output, shape index: {}]  }
   0x1   :  { %3095 = sst [smem:[#allocation20_spill]] %s3086_s2 }
   0x2   :  { %3096 = sst [smem:[#allocation21_spill]] %s3087_s3 }
   0x3   :  { %3097 = sst [smem:[#allocation22_spill]] %s3088_s4 }
   0x4   :  { %11 = vsyncpa [#allocation3], 0 }
   0x5   :  { %13 = vsyncpa [#allocation3 + $0x1], 0 }
   0x6   :  { %14 = vsyncpa [#allocation6], 0 }
   0x7   :  { %16 = vsyncpa [#allocation6 + $0x1], 0 }
   0x8   :  { %17 = vsyncpa [#allocation9], 0 }
   0x9   :  { %18 = vsyncpa [#allocation12], 0 }
   0xa   :  { %19 = vsyncpa [#allocation4], 0 }
   0xb   :  { %21 = vsyncpa [#allocation4 + $0x1], 0  ;;  %s2615_s21 = smov 0   ;;  %s2617_s22 = smov 0  }
   0xc   :  { %s2619_s23 = smov 0   ;;  %s2621_s24 = smov 0  }
   0xd LB: > { %s2564_s25 = smov [#allocation7]   ;;  %s2636_s27 = sadd.s32 4294967295, %s2562_s24   ;;  %s2562_s24 = sphi %s2621_s24, %s3124_s24   ;;  %s2558_s23 = sphi %s2619_s23, %s3123_s23   ;;  %s2554_s22 = sphi %s2617_s22, %s3122_s22   ;;  %s2550_s21 = sphi %s2615_s21, %s3121_s21  }
   0xe   : > { %s206_s26 = sshll.u32 %s2564_s25, 4  ;;  %p1594_p0 = scmp.ge.s32.totalorder %s2562_s24, 1  ;;  %s2641_s26 = int_to_ptr.vmem [resolvable:$true] %s206_s26 }
   0xf   : > { %p3091_p1 = scmp.eq.s32.totalorder %s2636_s27, 0  ;;  %p194_p2 = scmp.lt.s32.totalorder %s2562_s24, 3 }
  0x10   : > { %s2565_s29 = smov [#allocation8]   ;;  %s2566_s8 = smov [#allocation10]  }
  0x11   : > { %p2643_p3 = pnand %p1594_p0, %p194_p2  ;;  %s219_s30 = sshll.u32 %s2565_s29, 4  ;;  %s2656_s30 = int_to_ptr.vmem [resolvable:$true] %s219_s30 }
  0x12   : > { %s2658_s9 = sshll.u32 %s2566_s8, 4  ;;  %s3100_s2 = sld [smem:[#allocation20_spill]]  ;;  %s233_s9 = int_to_ptr.vmem [resolvable:$true] %s2658_s9 }
  0x13   : > { %s3098_s28 = scalar_select %p2643_p3, 1, 0 }
  0x14   : > { %p2217_p5 = pneg %p2643_p3 }
  0x16   : > { %p2652_p6 = pnand %p2217_p5, %p3091_p1 }
  0x18   : > { %s2308_s12 = scalar_lea.hbm %s3100_s2, 512  ;;  %p2668_p8 = pneg %p2652_p6 }
  0x19   : > { %p2309_p7 = scmp.ne.s32.totalorder %s3100_s2, %s2308_s12  ;;  %p2315_p11 = scmp.lt.u32.totalorder %s2308_s12, %s3100_s2 }
  0x1b   : > { %p2311_p9 = pnand %p2668_p8, %p2309_p7 }
  0x1d   : > { %p2312_p10 = pneg %p2311_p9 }
  0x1f   : > { %p2317_p12 = pnand %p2315_p11, %p2312_p10 }
  0x21   : > { %2320 = shalt.err (!%p2317_p12)
}
  0x22   : > { %s2321_s18 = scalar_lea.vmem %s2641_s26, 512  ;;  %p2329_p5 = scmp.lt.s32.totalorder %s2641_s26, %s2641_s26 }
  0x23   : > { %p2322_p13 = scmp.ne.s32.totalorder %s2641_s26, %s2321_s18  ;;  %p2330_p4 = scmp.lt.s32.totalorder %s2321_s18, %s2321_s18 }
  0x25   : > { %p2324_p0 = pnand %p2322_p13, %p2668_p8  ;;  %p2331_p7 = por %p2330_p4, %p2329_p5 }
  0x27   : > { %p2325_p2 = pneg %p2324_p0 }
  0x29   : > { %p2332_p9 = pnand %p2331_p7, %p2325_p2 }
  0x2b   : > { %2335 = shalt.err (!%p2332_p9)
}
  0x2c   : > { %s2567_s19 = smov 128   ;;  %s2568_s20 = smov 8  }
  0x2d   : > { %2220 = dma.hbm_to_vmem [thread:$0]  (!%p2652_p6), %s3100_s2, 512, %s2641_s26, [#allocation6], %s2567_s19, %s2567_s19, %s2568_s20  }
  0x2e   : > { %s3102_s3 = sld [smem:[#allocation21_spill]] }
  0x34   : > { %s2336_s11 = scalar_lea.hbm %s3102_s3, 18432 }
  0x35   : > { %p2337_p4 = scmp.ne.s32.totalorder %s3102_s3, %s2336_s11  ;;  %p2343_p12 = scmp.lt.u32.totalorder %s2336_s11, %s3102_s3 }
  0x37   : > { %p2339_p10 = pnand %p2337_p4, %p2668_p8 }
  0x39   : > { %p2340_p11 = pneg %p2339_p10 }
  0x3b   : > { %p2345_p13 = pnand %p2343_p12, %p2340_p11 }
  0x3d   : > { %2348 = shalt.err (!%p2345_p13)
}
  0x3e   : > { %s2349_s26 = scalar_lea.vmem %s2656_s30, 18432  ;;  %p2357_p7 = scmp.lt.s32.totalorder %s2656_s30, %s2656_s30 }
  0x3f   : > { %p2350_p0 = scmp.ne.s32.totalorder %s2656_s30, %s2349_s26  ;;  %p2358_p9 = scmp.lt.s32.totalorder %s2349_s26, %s2349_s26 }
  0x41   : > { %p2352_p2 = pnand %p2350_p0, %p2668_p8  ;;  %p2359_p4 = por %p2358_p9, %p2357_p7 }
  0x43   : > { %p2353_p5 = pneg %p2352_p2 }
  0x45   : > { %p2360_p10 = pnand %p2359_p4, %p2353_p5 }
  0x47   : > { %2363 = shalt.err (!%p2360_p10)
}
  0x48   : > { %s2569_s17 = smov 1152   ;;  %s2570_s18 = smov 72  }
  0x49   : > { %2223 = dma.hbm_to_vmem [thread:$0]  (!%p2652_p6), %s3102_s3, 18432, %s2656_s30, [#allocation9], %s2569_s17, %s2569_s17, %s2570_s18  }
  0x4a   : > { %s3103_s4 = sld [smem:[#allocation22_spill]] }
  0x50   : > { %s2364_s11 = scalar_lea.hbm %s3103_s4, 4096 }
  0x51   : > { %p2365_p11 = scmp.ne.s32.totalorder %s3103_s4, %s2364_s11  ;;  %p2371_p0 = scmp.lt.u32.totalorder %s2364_s11, %s3103_s4 }
  0x53   : > { %p2367_p12 = pnand %p2365_p11, %p2668_p8 }
  0x55   : > { %p2368_p13 = pneg %p2367_p12 }
  0x57   : > { %p2373_p2 = pnand %p2371_p0, %p2368_p13 }
  0x59   : > { %2376 = shalt.err (!%p2373_p2)
}
  0x5a   : > { %s2377_s26 = scalar_lea.vmem %s233_s9, 4096  ;;  %p2385_p4 = scmp.lt.s32.totalorder %s233_s9, %s233_s9 }
  0x5b   : > { %p2378_p5 = scmp.ne.s32.totalorder %s233_s9, %s2377_s26  ;;  %p2386_p10 = scmp.lt.s32.totalorder %s2377_s26, %s2377_s26 }
  0x5d   : > { %p2380_p7 = pnand %p2378_p5, %p2668_p8  ;;  %p2387_p1 = por %p2386_p10, %p2385_p4 }
  0x5f   : > { %p2381_p9 = pneg %p2380_p7 }
  0x61   : > { %p2388_p3 = pnand %p2387_p1, %p2381_p9 }
  0x63   : > { %2391 = shalt.err (!%p2388_p3)
}
  0x64   : > { %2226 = dma.hbm_to_vmem [thread:$0]  (!%p2652_p6), %s3103_s4, 4096, %s233_s9, [#allocation9], %s2567_s19, %s2567_s19, %s2568_s20  }
  0x65   : > { %s2571_s18 = smov [#allocation11]   ;;  %s2392_s10 = scalar_lea.hbm %s3089_s5, 512 }
  0x66   : > { %s245_s25 = sshll.u32 %s2571_s18, 4  ;;  %p2393_p1 = scmp.ne.s32.totalorder %s3089_s5, %s2392_s10  ;;  %s246_s25 = int_to_ptr.vmem [resolvable:$true] %s245_s25 }
  0x67   : > { %p2399_p12 = scmp.lt.u32.totalorder %s2392_s10, %s3089_s5 }
  0x68   : > { %p2395_p3 = pnand %p2393_p1, %p2668_p8 }
  0x6a   : > { %p2396_p11 = pneg %p2395_p3 }
  0x6c   : > { %p2401_p13 = pnand %p2399_p12, %p2396_p11 }
  0x6e   : > { %2404 = shalt.err (!%p2401_p13)
}
  0x6f   : > { %s2405_s9 = scalar_lea.vmem %s246_s25, 512  ;;  %p2413_p7 = scmp.lt.s32.totalorder %s246_s25, %s246_s25 }
  0x70   : > { %p2406_p0 = scmp.ne.s32.totalorder %s246_s25, %s2405_s9  ;;  %p2414_p9 = scmp.lt.s32.totalorder %s2405_s9, %s2405_s9 }
  0x72   : > { %p2408_p2 = pnand %p2406_p0, %p2668_p8  ;;  %p2415_p4 = por %p2414_p9, %p2413_p7 }
  0x74   : > { %p2409_p5 = pneg %p2408_p2 }
  0x76   : > { %p2416_p10 = pnand %p2415_p4, %p2409_p5 }
  0x78   : > { %2419 = shalt.err (!%p2416_p10)
}
  0x79   : > { %s2572_s19 = smov 256   ;;  %s2573_s15 = smov 16  }
  0x7a   : > { %2229 = dma.hbm_to_vmem [thread:$0]  (!%p2652_p6), %s3089_s5, 512, %s246_s25, [#allocation12], %s2572_s19, %s2572_s19, %s2573_s15  }
  0x7b   : > { %s1593_s26 = sadd.s32 4294967294, %s2562_s24   ;;  %s2757_s30 = sadd.s32 1, %s2562_s24  }
  0x7c   : > { %s31_s17 = ssub.s32 %s2562_s24, %s2757_s30  ;;  %s34_s18 = sadd.s32 1, %s2558_s23 }
  0x7d   : > { %p32_p8 = scmp.eq.s32.totalorder %s31_s17, 0  ;;  %p41_p1 = scmp.ne.s32.totalorder %s2558_s23, %s2554_s22 }
  0x7e   : > { %p42_p3 = scmp.eq.s32.totalorder %s2562_s24, 0  ;;  %p47_p11 = scmp.ne.s32.totalorder %s2554_s22, %s2550_s21 }
  0x7f   : > { %s2768_s29 = scalar_select %p32_p8, %s2558_s23, %s34_s18  }
  0x80   : > { %p2770_p12 = por %p42_p3, %p41_p1  ;;  %p3105_p13 = scmp.eq.s32.totalorder %s2636_s27, 0 }
  0x81   : > { %p181_p0 = scmp.eq.s32.totalorder %s2636_s27, 1  ;;  %p187_p2 = scmp.eq.s32.totalorder %s1593_s26, 1 }
  0x82   : > { %p2776_p6 = por %p3105_p13, %p47_p11  ;;  %p2245_p5 = scmp.lt.s32.totalorder %s2562_s24, 2 }
  0x83   : > { %s259_s8 = sand.u32 1, %s2558_s23   ;;  %p2783_p7 = por %p181_p0, %p41_p1 }
  0x84   : > { %s3106_s25 = scalar_select %p2776_p6, 1, 0 }
  0x85   : > { %s3107_s10 = scalar_select %p2783_p7, 1, 0 }
  0x86   : > { %p2787_p9 = por %p187_p2, %p47_p11  ;;  %s2791_s12 = sshll.u32 %s259_s8, 3 }
  0x87   : > { %s1601_s13 = sshll.u32 %s2562_s24, 7  ;;  %s263_s15 = scalar_lea.vmem [#allocation2], %s2791_s12 }
  0x88   : > { %s3108_s11 = scalar_select %p2787_p9, 1, 0 }
  0x89   : > { %s2797_s19 = scalar_lea.hbm %s3084_s0, %s1601_s13  ;;  %s270_s20 = sshll.u32 %s263_s15, 4  ;;  %s2800_s20 = int_to_ptr.vmem [resolvable:$true] %s270_s20 }
  0x8a   : > { %p2804_p4 = pnand %p2245_p5, %p2770_p12  ;;  %s2811_s18 = scalar_lea.hbm %s3085_s1, %s1601_s13 }
  0x8b   : > { %s277_s14 = sand.u32 1, %s2562_s24   ;;  %s260_s9 = scalar_lea.sflag [#allocation3], %s259_s8 }
  0x8c   : > { %s2420_s2 = scalar_lea.hbm %s2797_s19, 128  ;;  %p2422_p8 = pneg %p2804_p4 }
  0x8d   : > { %p2421_p10 = scmp.ne.s32.totalorder %s2797_s19, %s2420_s2  ;;  %s2425_s3 = scalar_lea.hbm %s3084_s0, 256 }
  0x8e   : > { %p2426_p11 = scmp.lt.u32.totalorder %s2797_s19, %s3084_s0  ;;  %p2427_p12 = scmp.lt.u32.totalorder %s2425_s3, %s2420_s2 }
  0x8f   : > { %p2423_p1 = pnand %p2422_p8, %p2421_p10  ;;  %p2429_p0 = scmp.lt.u32.totalorder %s2420_s2, %s2797_s19 }
  0x90   : > { %p2428_p13 = por %p2427_p12, %p2426_p11 }
  0x91   : > { %p2424_p3 = pneg %p2423_p1 }
  0x92   : > { %p2430_p2 = por %p2429_p0, %p2428_p13 }
  0x94   : > { %p2431_p5 = pnand %p2430_p2, %p2424_p3 }
  0x96   : > { %2434 = shalt.err (!%p2431_p5)
}
  0x97   : > { %s2435_s8 = scalar_lea.vmem %s2800_s20, 128  ;;  %s2574_s13 = smov [#allocation2]  }
  0x98   : > { %p2436_p10 = scmp.ne.s32.totalorder %s2800_s20, %s2435_s8  ;;  %s2440_s17 = sshll.u32 %s2574_s13, 4  ;;  %s2441_s17 = int_to_ptr.vmem [resolvable:$false] %s2440_s17 }
  0x99   : > { %s2442_s4 = scalar_lea.vmem %s2441_s17, 256  ;;  %p2443_p7 = scmp.lt.s32.totalorder %s2800_s20, %s2441_s17 }
  0x9a   : > { %p2438_p1 = pnand %p2436_p10, %p2422_p8  ;;  %p2444_p11 = scmp.lt.s32.totalorder %s2442_s4, %s2435_s8 }
  0x9c   : > { %p2439_p9 = pneg %p2438_p1  ;;  %p2445_p12 = por %p2444_p11, %p2443_p7 }
  0x9e   : > { %p2446_p13 = pnand %p2445_p12, %p2439_p9 }
  0xa0   : > { %2449 = shalt.err (!%p2446_p13)
}
  0xa1   : > { %2233 = dma.hbm_to_vmem [thread:$0]  (!%p2804_p4), %s2797_s19, 128, %s2800_s20, %s260_s9  }
  0xa2   : > { %s281_s2 = scalar_lea.vmem [#allocation5], %s2791_s12  ;;  %s278_s7 = scalar_lea.sflag [#allocation6], %s277_s14 }
  0xa3   : > { %s288_s3 = sshll.u32 %s281_s2, 4  ;;  %s2450_s15 = scalar_lea.hbm %s2811_s18, 128  ;;  %s289_s3 = int_to_ptr.vmem [resolvable:$true] %s288_s3 }
  0xa4   : > { %p2451_p7 = scmp.ne.s32.totalorder %s2811_s18, %s2450_s15  ;;  %s2455_s13 = scalar_lea.hbm %s3085_s1, 256 }
  0xa5   : > { %p2456_p0 = scmp.lt.u32.totalorder %s2811_s18, %s3085_s1  ;;  %p2457_p2 = scmp.lt.u32.totalorder %s2455_s13, %s2450_s15 }
  0xa6   : > { %p2453_p9 = pnand %p2451_p7, %p2422_p8  ;;  %p2459_p10 = scmp.lt.u32.totalorder %s2450_s15, %s2811_s18 }
  0xa7   : > { %p2458_p5 = por %p2457_p2, %p2456_p0 }
  0xa8   : > { %p2454_p3 = pneg %p2453_p9 }
  0xa9   : > { %p2460_p1 = por %p2459_p10, %p2458_p5 }
  0xab   : > { %p2461_p11 = pnand %p2460_p1, %p2454_p3 }
  0xad   : > { %2464 = shalt.err (!%p2461_p11)
}
  0xae   : > { %s2465_s12 = scalar_lea.vmem %s289_s3, 128  ;;  %s2575_s19 = smov [#allocation5]  }
  0xaf   : > { %p2466_p12 = scmp.ne.s32.totalorder %s289_s3, %s2465_s12  ;;  %s2470_s20 = sshll.u32 %s2575_s19, 4  ;;  %s2471_s20 = int_to_ptr.vmem [resolvable:$false] %s2470_s20 }
  0xb0   : > { %s2472_s14 = scalar_lea.vmem %s2471_s20, 256  ;;  %p2473_p9 = scmp.lt.s32.totalorder %s289_s3, %s2471_s20 }
  0xb1   : > { %p2468_p13 = pnand %p2466_p12, %p2422_p8  ;;  %p2474_p6 = scmp.lt.s32.totalorder %s2472_s14, %s2465_s12 }
  0xb3   : > { %p2469_p7 = pneg %p2468_p13  ;;  %p2475_p0 = por %p2474_p6, %p2473_p9 }
  0xb5   : > { %p2476_p2 = pnand %p2475_p0, %p2469_p7 }
  0xb7   : > { %2479 = shalt.err (!%p2476_p2)
}
  0xb8   : > { %2236 = dma.hbm_to_vmem [thread:$0]  (!%p2804_p4), %s2811_s18, 128, %s289_s3, %s278_s7  }
  0xb9   : > { %p3110_p3 = scmp.ne.s32.totalorder %s3098_s28, 0 }
  0xba   : > { %s2864_s9 = sand.u32 (!%p3110_p3), 1, %s2554_s22   ;;  %p3111_p6 = scmp.ne.s32.totalorder (!%p3110_p3), %s3106_s25, 0 }
  0xbb   : > { %297 = sbr.rel (%p3110_p3) target bundleno = 3041 (0xbe1), region = 44  ;;  %s2867_s2 = sshll.u32 (!%p3110_p3), %s2864_s9, 3 }
  0xbc   : > { %s300_s15 = scalar_lea.sflag (!%p3110_p3), [#allocation3], %s2864_s9  ;;  %s303_s26 = scalar_lea.vmem (!%p3110_p3), [#allocation2], %s2867_s2 }
  0xc2   : > { %2525 = dma.done.wait (%p3111_p6), %s300_s15, 128  }
  0xc3   : > { %2527 = vsyncadd (%p3111_p6), %s300_s15, 4294967168  ;;  %s308_s28 = sand.u32 1, %s2636_s27   ;;  %s312_s18 = scalar_lea.vmem [#allocation5], %s2867_s2 }
  0xc4   : > { %s309_s16 = scalar_lea.sflag [#allocation6], %s308_s28 }
  0xc5   : > { %2529 = dma.done.wait (%p3111_p6), %s309_s16, 128  }
  0xc6   : > { %2531 = vsyncadd (%p3111_p6), %s309_s16, 4294967168  ;;  %p3112_p4 = scmp.eq.s32.totalorder %s2636_s27, 0 }
  0xc8   : > { %2533 = dma.done.wait (%p3112_p4), [#allocation6], 512   ;;  %p3113_p8 = pmov %p3112_p4 }
  0xc9   : > { %p3114_p5 = pmov %p3112_p4 }
  0xca   : > { %2535 = vsyncadd (%p3113_p8), [#allocation6], 4294966784 }
  0xcb   : > { %2537 = dma.done.wait (%p3114_p5), [#allocation9], 22528   ;;  %p3115_p10 = pmov %p3112_p4 }
  0xcc   : > { %p3116_p1 = pmov %p3112_p4 }
  0xcd   : > { %2539 = vsyncadd (%p3115_p10), [#allocation9], 4294944768 }
  0xce   : > { %2541 = dma.done.wait (%p3116_p1), [#allocation12], 512   ;;  %p3117_p11 = pmov %p3116_p1 }
  0xcf   : > { %v2576_v0 = vmov 0.0   ;;  %v371_v1 = vld [vmem:[#allocation8 + $0x8] sm:$0xff]  ;;  %v374_v2 = vld [vmem:[#allocation8 + $0x50] sm:$0xff]  ;;  %v370_v3 = vld [vmem:[#allocation8] sm:$0xff]  ;;  %v2577_v50 = vmov 0.0|0.0   ;;  %vm2578_vm0 = vmmov 0  }
  0xd0   : > { %2543 = vsyncadd (%p3117_p11), [#allocation12], 4294966784  ;;  %482 = vmatprep.mubr.f32.mxu0 %v2576_v0  ;;  %v1961_v4 = vpack.c.bf16 %v374_v2, %v371_v1  ;;  %v373_v5 = vld [vmem:[#allocation8 + $0x48] sm:$0xff]  ;;  %v377_v6 = vld [vmem:[#allocation8 + $0x98] sm:$0xff]  ;;  %1993 = vmatprep.subr.bf16.mxu1 %v2577_v50  ;;  %vm653_vm1 = vcmask 261120   ;;  %s1615_s25 = sshll.u32 %s2636_s27, 7 }
  0xd1   : > { %v380_v7 = vld [vmem:[#allocation8 + $0xe0] sm:$0xff]  ;;  %v1963_v8 = vpack.c.bf16 %v373_v5, %v370_v3  ;;  %v376_v10 = vld [vmem:[#allocation8 + $0x90] sm:$0xff]  ;;  %v379_v11 = vld [vmem:[#allocation8 + $0xd8] sm:$0xff]  ;;  %1785 = vmatprep.mubr.msk.f32.mxu1 %vm2578_vm0, %v2576_v0  ;;  %s361_s3 = scalar_lea.vmem [#allocation13], %s2867_s2  ;;  %s3040_s17 = scalar_lea.hbm %s3090_s6, %s1615_s25 }
  0xd2   : > { %v1965_v9 = vpack.c.bf16 %v380_v7, %v377_v6  ;;  %v383_v12 = vld [vmem:[#allocation8 + $0x128] sm:$0xff]  ;;  %1962 = vmatprep.subr.bf16.mxu0 %v1961_v4  ;;  %v386_v13 = vld [vmem:[#allocation8 + $0x170] sm:$0xff]  ;;  %v1967_v14 = vpack.c.bf16 %v379_v11, %v376_v10  ;;  %v382_v16 = vld [vmem:[#allocation8 + $0x120] sm:$0xff]  ;;  %s1462_s7 = sshll.u32 %s361_s3, 4  ;;  %s1449_s4 = scalar_lea.sflag [#allocation4], %s2864_s9  ;;  %s3042_s7 = int_to_ptr.vmem [resolvable:$true] %s1462_s7 }
  0xd3   : > { %1964 = vmatpush1.bf16.msra.mxu0 %v1963_v8  ;;  %v1969_v15 = vpack.c.bf16 %v386_v13, %v383_v12  ;;  %v385_v17 = vld [vmem:[#allocation8 + $0x168] sm:$0xff]  ;;  %v389_v18 = vld [vmem:[#allocation8 + $0x1b8] sm:$0xff]  ;;  %v392_v19 = vld [vmem:[#allocation8 + $0x200] sm:$0xff]  ;;  %v559_v12 = vlaneseq  ;;  %s2480_s12 = scalar_lea.vmem %s3042_s7, 128  ;;  %p3118_p13 = scmp.ne.s32.totalorder %s3107_s10, 0 }
  0xd4   : > { %1966 = vmatprep.subr.bf16.mxu0 %v1965_v9  ;;  %v1971_v20 = vpack.c.bf16 %v385_v17, %v382_v16  ;;  %v1973_v21 = vpack.c.bf16 %v392_v19, %v389_v18  ;;  %v388_v22 = vld [vmem:[#allocation8 + $0x1b0] sm:$0xff]  ;;  %v391_v23 = vld [vmem:[#allocation8 + $0x1f8] sm:$0xff]  ;;  %v395_v24 = vld [vmem:[#allocation8 + $0x248] sm:$0xff]  ;;  %p2481_p12 = scmp.ne.s32.totalorder %s3042_s7, %s2480_s12  ;;  %s2579_s27 = smov [#allocation13]  }
  0xd5   : > { %v398_v25 = vld [vmem:[#allocation8 + $0x290] sm:$0xff]  ;;  %v1975_v26 = vpack.c.bf16 %v391_v23, %v388_v22  ;;  %v394_v28 = vld [vmem:[#allocation8 + $0x240] sm:$0xff]  ;;  %v397_v29 = vld [vmem:[#allocation8 + $0x288] sm:$0xff]  ;;  %v2916_v13 = vshrl.u32 %v559_v12, 7  ;;  %s2484_s19 = sshll.u32 %s2579_s27, 4  ;;  %s2485_s19 = int_to_ptr.vmem [resolvable:$false] %s2484_s19 }
  0xd6   : > { %v1977_v27 = vpack.c.bf16 %v398_v25, %v395_v24  ;;  %v401_v30 = vld [vmem:[#allocation8 + $0x2d8] sm:$0xff]  ;;  %v404_v31 = vld [vmem:[#allocation8 + $0x320] sm:$0xff]  ;;  %v1979_v32 = vpack.c.bf16 %v397_v29, %v394_v28  ;;  %v400_v34 = vld [vmem:[#allocation8 + $0x2d0] sm:$0xff]  ;;  %p2482_p7 = pnand %p2481_p12, %p3118_p13  ;;  %s2486_s20 = scalar_lea.vmem %s2485_s19, 256 }
  0xd7   : > { %1968 = vmatpush1.bf16.msra.mxu0 %v1967_v14  ;;  %v1981_v33 = vpack.c.bf16 %v404_v31, %v401_v30  ;;  %v403_v35 = vld [vmem:[#allocation8 + $0x318] sm:$0xff]  ;;  %v407_v36 = vld [vmem:[#allocation8 + $0x368] sm:$0xff]  ;;  %v410_v37 = vld [vmem:[#allocation8 + $0x3b0] sm:$0xff]  ;;  %v566_v14 = vsub.s32 1, %v2916_v13  ;;  %v561_v29 = vsub.s32 0, %v2916_v13  ;;  %p2487_p0 = scmp.lt.s32.totalorder %s3042_s7, %s2485_s19  ;;  %p2488_p2 = scmp.lt.s32.totalorder %s2486_s20, %s2480_s12 }
  0xd8   : > { %1970 = vmatprep.subr.bf16.mxu0 %v1969_v15  ;;  %v1983_v38 = vpack.c.bf16 %v403_v35, %v400_v34  ;;  %v1985_v39 = vpack.c.bf16 %v410_v37, %v407_v36  ;;  %v406_v40 = vld [vmem:[#allocation8 + $0x360] sm:$0xff]  ;;  %v409_v41 = vld [vmem:[#allocation8 + $0x3a8] sm:$0xff]  ;;  %v413_v42 = vld [vmem:[#allocation8 + $0x3f8] sm:$0xff]  ;;  %p2483_p9 = pneg %p2482_p7 }
  0xd9   : > { %v416_v43 = vld [vmem:[#allocation8 + $0x440] sm:$0xff]  ;;  %v1987_v44 = vpack.c.bf16 %v409_v41, %v406_v40  ;;  %v412_v46 = vld [vmem:[#allocation8 + $0x3f0] sm:$0xff]  ;;  %v415_v47 = vld [vmem:[#allocation8 + $0x438] sm:$0xff]  ;;  %v571_v40 = vsub.s32 2, %v2916_v13  ;;  %p2489_p3 = por %p2488_p2, %p2487_p0 }
  0xda   : > { %v1989_v45 = vpack.c.bf16 %v416_v43, %v413_v42  ;;  %v1991_v48 = vpack.c.bf16 %v415_v47, %v412_v46  ;;  %v2896_v49 = vld [vmem:[%s303_s26] sm:$0xff]  ;;  %v372_v51 = vld [vmem:[#allocation8 + $0x10] sm:$0xff]  ;;  %v375_v52 = vld [vmem:[#allocation8 + $0x58] sm:$0xff] }
  0xdb   : > { %1972 = vmatpush1.bf16.msra.mxu0 %v1971_v20  ;;  %v378_v53 = vld [vmem:[#allocation8 + $0xa0] sm:$0xff]  ;;  %v1994_v54 = vpack.c.bf16 %v375_v52, %v372_v51  ;;  %v381_v55 = vld [vmem:[#allocation8 + $0xe8] sm:$0xff]  ;;  %v384_v57 = vld [vmem:[#allocation8 + $0x130] sm:$0xff]  ;;  %p2490_p6 = pnand %p2489_p3, %p2483_p9 }
  0xdc   : > { %1974 = vmatprep.subr.bf16.mxu0 %v1973_v21  ;;  %v1997_v56 = vpack.c.bf16 %v381_v55, %v378_v53  ;;  %v387_v58 = vld [vmem:[#allocation8 + $0x178] sm:$0xff]  ;;  %v390_v60 = vld [vmem:[#allocation8 + $0x1c0] sm:$0xff]  ;;  %v393_v61 = vld [vmem:[#allocation8 + $0x208] sm:$0xff] }
  0xdd   : > { %1995 = vmatpush3.bf16.msra.mxu1 %v1994_v54  ;;  %v2000_v59 = vpack.c.bf16 %v387_v58, %v384_v57  ;;  %v2003_v62 = vpack.c.bf16 %v393_v61, %v390_v60  ;;  %v396_v63 = vld [vmem:[#allocation8 + $0x250] sm:$0xff]  ;;  %v399_v1 = vld [vmem:[#allocation8 + $0x298] sm:$0xff]  ;;  %v402_v3 = vld [vmem:[#allocation8 + $0x2e0] sm:$0xff] }
  0xde   : > { %1996 = vmatprep.subr.bf16.mxu1 %v2577_v50  ;;  %v2006_v2 = vpack.c.bf16 %v399_v1, %v396_v63  ;;  %v405_v4 = vld [vmem:[#allocation8 + $0x328] sm:$0xff]  ;;  %v408_v6 = vld [vmem:[#allocation8 + $0x370] sm:$0xff]  ;;  %v411_v7 = vld [vmem:[#allocation8 + $0x3b8] sm:$0xff] }
  0xdf   : > { %1976 = vmatpush1.bf16.msra.mxu0 %v1975_v26  ;;  %v2009_v5 = vpack.c.bf16 %v405_v4, %v402_v3  ;;  %v2012_v8 = vpack.c.bf16 %v411_v7, %v408_v6  ;;  %v414_v9 = vld [vmem:[#allocation8 + $0x400] sm:$0xff]  ;;  %v417_v10 = vld [vmem:[#allocation8 + $0x448] sm:$0xff]  ;;  %v368_v25 = vld [vmem:[#allocation7 + $0x10] sm:$0xff] }
  0xe0   : > { %1978 = vmatprep.subr.bf16.mxu0 %v1977_v27  ;;  %v2015_v11 = vpack.c.bf16 %v417_v10, %v414_v9  ;;  %v2919_v15 = vld [vmem:[#allocation11] sm:$0xff]  ;;  %v2926_v19 = vld [vmem:[#allocation7 + $0x8] sm:$0xff]  ;;  %v369_v26 = vld [vmem:[#allocation7 + $0x18] sm:$0xff] }
  0xe1   : > { %1998 = vmatpush3.bf16.msra.mxu1 %v1997_v56  ;;  %v567_v16 = vrot.slane %v2919_v15, %v566_v14  ;;  %v2924_v18 = vld [vmem:[#allocation7] sm:$0xff]  ;;  %v562_v31 = vrot.slane %v2919_v15, %v561_v29  ;;  %v582_v35 = vld [vmem:[%s312_s18] sm:$0xff]  ;;  %v572_v41 = vrot.slane %v2919_v15, %v571_v40  ;;  %v807_v53 = vld [vmem:[#allocation8 + $0xa8] sm:$0xff] }
  0xe2   : > { %1999 = vmatprep.subr.bf16.mxu1 %v2577_v50  ;;  %v805_v51 = vld [vmem:[#allocation8 + $0x18] sm:$0xff]  ;;  %v806_v52 = vld [vmem:[#allocation8 + $0x60] sm:$0xff]  ;;  %v808_v55 = vld [vmem:[#allocation8 + $0xf0] sm:$0xff]  ;;  %v2030_v63 = vpack.c.bf16 %v2926_v19, %v2924_v18 }
  0xe3   : > { %1980 = vmatpush1.bf16.msra.mxu0 %v1979_v32  ;;  %v2036_v54 = vpack.c.bf16 %v806_v52, %v805_v51  ;;  %v2039_v56 = vpack.c.bf16 %v808_v55, %v807_v53  ;;  %v809_v57 = vld [vmem:[#allocation8 + $0x138] sm:$0xff]  ;;  %v810_v58 = vld [vmem:[#allocation8 + $0x180] sm:$0xff]  ;;  %v811_v3 = vld [vmem:[#allocation8 + $0x1c8] sm:$0xff] }
  0xe4   : > { %1982 = vmatprep.subr.bf16.mxu0 %v1981_v33  ;;  %v812_v4 = vld [vmem:[#allocation8 + $0x210] sm:$0xff]  ;;  %v813_v6 = vld [vmem:[#allocation8 + $0x258] sm:$0xff]  ;;  %v814_v7 = vld [vmem:[#allocation8 + $0x2a0] sm:$0xff] }
  0xe5   : > { %2001 = vmatpush3.bf16.msra.mxu1 %v2000_v59  ;;  %v2042_v59 = vpack.c.bf16 %v810_v58, %v809_v57  ;;  %v815_v9 = vld [vmem:[#allocation8 + $0x2e8] sm:$0xff]  ;;  %v816_v10 = vld [vmem:[#allocation8 + $0x330] sm:$0xff]  ;;  %v817_v12 = vld [vmem:[#allocation8 + $0x378] sm:$0xff] }
  0xe6   : > { %2002 = vmatprep.subr.bf16.mxu1 %v2577_v50  ;;  %v928_v52 = vld [vmem:[#allocation8 + $0x188] sm:$0xff]  ;;  %v931_v58 = vld [vmem:[#allocation8 + $0x1d8] sm:$0xff] }
  0xe7   : > { %1984 = vmatpush1.bf16.msra.mxu0 %v1983_v38 }
  0xe8   : > { %1986 = vmatprep.subr.bf16.mxu0 %v1985_v39 }
  0xe9   : > { %2004 = vmatpush3.bf16.msra.mxu1 %v2003_v62 }
  0xea   : > { %2005 = vmatprep.subr.bf16.mxu1 %v2577_v50 }
  0xeb   : > { %1988 = vmatpush1.bf16.msra.mxu0 %v1987_v44 }
  0xec   : > { %1990 = vmatprep.subr.bf16.mxu0 %v1989_v45 }
  0xed   : > { %2007 = vmatpush3.bf16.msra.mxu1 %v2006_v2  ;;  %v2033_v2 = vpack.c.bf16 %v369_v26, %v368_v25 }
  0xee   : > { %2008 = vmatprep.subr.bf16.mxu1 %v2577_v50 }
  0xef   : > { %1992 = vmatpush1.bf16.msra.mxu0 %v1991_v48 }
  0xf0   : > { %2017 = vmatprep.subr.bf16.mxu0 %v2577_v50 }
  0xf1   : > { %2010 = vmatpush3.bf16.msra.mxu1 %v2009_v5  ;;  %v2045_v5 = vpack.c.bf16 %v812_v4, %v811_v3  ;;  %v934_v4 = vld [vmem:[#allocation8 + $0x260] sm:$0xff] }
  0xf2   : > { %483 = vmatmul.mubr.f32.vlgmr.msra.gmra.mrb[0].mxu0 %v2896_v49  ;;  %2011 = vmatprep.subr.bf16.mxu1 %v2577_v50 }
  0xf3   : > { %1796 = vmatprep.mubr.msk.f32.mxu0 %vm2578_vm0, %v2576_v0 }
  0xf5   : > { %2013 = vmatpush3.bf16.msra.mxu1 %v2012_v8  ;;  %v2048_v8 = vpack.c.bf16 %v814_v7, %v813_v6  ;;  %v939_v7 = vld [vmem:[#allocation8 + $0x2f8] sm:$0xff] }
  0xf6   : > { %2014 = vmatprep.subr.bf16.mxu1 %v2577_v50 }
  0xf9   : > { %2016 = vmatpush3.bf16.msra.mxu1 %v2015_v11  ;;  %v2051_v11 = vpack.c.bf16 %v816_v10, %v815_v9  ;;  %v938_v9 = vld [vmem:[#allocation8 + $0x2f0] sm:$0xff] }
  0xfa   : > { %2023 = vmatprep.subr.bf16.mxu1 %v2577_v50 }
  0xfc   : > { %1786 = vmatmul.mubr.f32.vlgmr.msra.gmra.mrb[0].mxu1 %v2896_v49 }
  0xfd   : > { %1807 = vmatprep.mubr.msk.f32.mxu1 %vm2578_vm0, %v2576_v0 }
 0x1c5   : > { %v484_v17 = vpop.f32.mrb[0].mxu0 }
 0x1c6   : > { %v486_v20 = vpop.f32.mrb[1].mxu0  ;;  %v563_v32 = vadd.f32 %v562_v31, %v484_v17 }
 0x1c7   : > { %v568_v21 = vadd.f32 %v567_v16, %v486_v20  ;;  %v818_v16 = vld [vmem:[#allocation8 + $0x3c0] sm:$0xff] }
 0x1c8   : > { %v2054_v17 = vpack.c.bf16 %v818_v16, %v817_v12  ;;  %v943_v12 = vld [vmem:[#allocation8 + $0x388] sm:$0xff]  ;;  %v945_v16 = vld [vmem:[#allocation8 + $0x3d0] sm:$0xff] }
 0x1c9   : > { %v574_v22 = vmul.f32 %v568_v21, %v2924_v18  ;;  %v575_v23 = vmul.f32 %v568_v21, %v2926_v19  ;;  %v576_v27 = vmul.f32 %v568_v21, %v368_v25  ;;  %v577_v28 = vmul.f32 %v568_v21, %v369_v26 }
 0x1cb   : > { %v2018_v24 = vpack.c.bf16 %v575_v23, %v574_v22  ;;  %v2021_v30 = vpack.c.bf16 %v577_v28, %v576_v27  ;;  %v823_v27 = vsub.s32 3, %v2916_v13 }
 0x1cd   : > { %2019 = vmatpush3.bf16.xpose.msra.mxu0 %v2018_v24  ;;  %v824_v28 = vrot.slane %v2919_v15, %v823_v27 }
 0x1ce   : > { %2020 = vmatprep.subr.bf16.mxu0 %v2577_v50 }
 0x1cf   : > { %v555_v33 = vpop.f32.mrb[0].mxu1 }
 0x1d0   : > { %v1787_v34 = vpop.f32.mrb[1].mxu1  ;;  %v573_v42 = vadd.f32 %v572_v41, %v555_v33  ;;  %v925_v41 = vld [vmem:[#allocation8 + $0x100] sm:$0xff] }
 0x1d1   : > { %v919_v34 = vld [vmem:[#allocation8 + $0x28] sm:$0xff] }
 0x1d2   : > { %v578_v43 = vmul.f32 %v573_v42, %v2924_v18  ;;  %v579_v44 = vmul.f32 %v573_v42, %v2926_v19  ;;  %v580_v45 = vmul.f32 %v573_v42, %v368_v25  ;;  %v581_v46 = vmul.f32 %v573_v42, %v369_v26  ;;  %v819_v18 = vld [vmem:[#allocation8 + $0x408] sm:$0xff]  ;;  %v820_v19 = vld [vmem:[#allocation8 + $0x450] sm:$0xff] }
 0x1d3   : > { %v2057_v20 = vpack.c.bf16 %v820_v19, %v819_v18  ;;  %v2083_v18 = vpack.c.bf16 %v945_v16, %v943_v12  ;;  %v942_v19 = vld [vmem:[#allocation8 + $0x380] sm:$0xff]  ;;  %v1057_v16 = vld [vmem:[#allocation10 + $0x50] sm:$0xff] }
 0x1d4   : > { %v2024_v47 = vpack.c.bf16 %v579_v44, %v578_v43  ;;  %v2027_v48 = vpack.c.bf16 %v581_v46, %v580_v45  ;;  %v922_v44 = vld [vmem:[#allocation8 + $0xb0] sm:$0xff]  ;;  %v924_v45 = vld [vmem:[#allocation8 + $0xf8] sm:$0xff]  ;;  %v927_v46 = vld [vmem:[#allocation8 + $0x148] sm:$0xff] }
 0x1d5   : > { %2022 = vmatpush3.bf16.xpose.msra.mxu0 %v2021_v30 }
 0x1d6   : > { %2035 = vmatprep.subr.bf16.mxu0 %v2577_v50  ;;  %2025 = vmatpush3.bf16.msra.mxu1 %v2024_v47  ;;  %v929_v47 = vld [vmem:[#allocation8 + $0x190] sm:$0xff] }
 0x1d7   : > { %2026 = vmatprep.subr.bf16.mxu1 %v2577_v50  ;;  %v2067_v51 = vpack.c.bf16 %v929_v47, %v927_v46  ;;  %v1048_v46 = vld [vmem:[#allocation10 + $0x8] sm:$0xff] }
 0x1da   : > { %2028 = vmatpush3.bf16.msra.mxu1 %v2027_v48  ;;  %v2065_v48 = vpack.c.bf16 %v924_v45, %v922_v44  ;;  %v1047_v45 = vld [vmem:[#allocation10] sm:$0xff] }
 0x1db   : > { %2029 = vmatprep.subr.bf16.mxu1 %v2577_v50  ;;  %v2093_v47 = vpack.c.bf16 %v1048_v46, %v1047_v45 }
 0x1dc   : > { %1797 = vmatmul.mubr.f32.vlgmr.msra.gmra.mrb[2].mxu0 %v563_v32 }
 0x1dd   : > { %1853 = vmatprep.mubr.msk.f32.mxu0 %vm2578_vm0, %v2576_v0  ;;  %2037 = vmatpush3.bf16.msra.mxu0 %v2036_v54 }
 0x1de   : > { %2038 = vmatprep.subr.bf16.mxu0 %v2577_v50 }
 0x1e1   : > { %2040 = vmatpush3.bf16.msra.mxu0 %v2039_v56 }
 0x1e2   : > { %2041 = vmatprep.subr.bf16.mxu0 %v2577_v50 }
 0x1e5   : > { %2043 = vmatpush3.bf16.msra.mxu0 %v2042_v59  ;;  %v933_v59 = vld [vmem:[#allocation8 + $0x220] sm:$0xff] }
 0x1e6   : > { %2044 = vmatprep.subr.bf16.mxu0 %v2577_v50 }
 0x1e9   : > { %2046 = vmatpush3.bf16.msra.mxu0 %v2045_v5  ;;  %v936_v5 = vld [vmem:[#allocation8 + $0x2a8] sm:$0xff] }
 0x1ea   : > { %2047 = vmatprep.subr.bf16.mxu0 %v2577_v50  ;;  %v2077_v6 = vpack.c.bf16 %v936_v5, %v934_v4  ;;  %v1071_v4 = vld [vmem:[#allocation10 + $0xc0] sm:$0xff]  ;;  %v1072_v5 = vld [vmem:[#allocation10 + $0xc8] sm:$0xff] }
 0x1ed   : > { %2049 = vmatpush3.bf16.msra.mxu0 %v2048_v8  ;;  %v941_v8 = vld [vmem:[#allocation8 + $0x340] sm:$0xff] }
 0x1ee   : > { %2050 = vmatprep.subr.bf16.mxu0 %v2577_v50  ;;  %v2079_v10 = vpack.c.bf16 %v941_v8, %v939_v7  ;;  %v2107_v7 = vpack.c.bf16 %v1072_v5, %v1071_v4  ;;  %v1056_v8 = vld [vmem:[#allocation10 + $0x48] sm:$0xff] }
 0x1f1   : > { %2052 = vmatpush3.bf16.msra.mxu0 %v2051_v11  ;;  %v940_v11 = vld [vmem:[#allocation8 + $0x338] sm:$0xff] }
 0x1f2   : > { %2053 = vmatprep.subr.bf16.mxu0 %v2577_v50 }
 0x1f5   : > { %2055 = vmatpush3.bf16.msra.mxu0 %v2054_v17  ;;  %v2081_v17 = vpack.c.bf16 %v940_v11, %v938_v9  ;;  %v1073_v9 = vld [vmem:[#allocation10 + $0xd0] sm:$0xff] }
 0x1f6   : > { %2056 = vmatprep.subr.bf16.mxu0 %v2577_v50 }
 0x1f9   : > { %2058 = vmatpush3.bf16.msra.mxu0 %v2057_v20  ;;  %v944_v20 = vld [vmem:[#allocation8 + $0x3c8] sm:$0xff] }
 0x2af   : > { %v649_v36 = vpop.f32.mrb[2].mxu0 }
 0x2b0   : > { %v650_v37 = vadd.f32 %v649_v36, %v582_v35  ;;  %v1798_v38 = vpop.f32.mrb[3].mxu0  ;;  %v921_v35 = vld [vmem:[#allocation8 + $0x70] sm:$0xff]  ;;  %v918_v36 = vld [vmem:[#allocation8 + $0x20] sm:$0xff] }
 0x2b1   : > { %v920_v38 = vld [vmem:[#allocation8 + $0x68] sm:$0xff] }
 0x2b2   : > { %v654_v39 = vsel %vm653_vm1, %v650_v37, -inf  ;;  %v2061_v42 = vpack.c.bf16 %v920_v38, %v918_v36 }
 0x2b3   : > { %655 = vmax.xlane.f32.xlu0 %v654_v39  ;;  %v923_v39 = vld [vmem:[#allocation8 + $0xb8] sm:$0xff] }
 0x2b4   : > { %v2063_v43 = vpack.c.bf16 %v925_v41, %v923_v39 }
 0x340   : > { %v656_v60 = vpop.xlane.xlu0 %655 }
 0x341   : > { %v657_v61 = vsub.f32 %v650_v37, %v656_v60  ;;  %v2059_v37 = vpack.c.bf16 %v921_v35, %v919_v34  ;;  %v2071_v60 = vpack.c.bf16 %v933_v59, %v931_v58  ;;  %v915_v34 = vsub.s32 5, %v2916_v13  ;;  %v1051_v58 = vld [vmem:[#allocation10 + $0x20] sm:$0xff]  ;;  %v1052_v59 = vld [vmem:[#allocation10 + $0x28] sm:$0xff] }
 0x343   : > { %v658_v62 = vmul.f32 1.442695, %v657_v61  ;;  %v930_v61 = vld [vmem:[#allocation8 + $0x1d0] sm:$0xff]  ;;  %v916_v38 = vrot.slane %v2919_v15, %v915_v34  ;;  %v952_v34 = vsub.s32 6, %v2916_v13 }
 0x345   : > { %2296 = vpow2.f32 %v658_v62  ;;  %v932_v62 = vld [vmem:[#allocation8 + $0x218] sm:$0xff] }
 0x34f   : > { %v2297_v1 = vpop.eup %2296 }
 0x350   : > { %1808 = vmatmul.mubr.msk.f32.vlgmr.msra.gmra.mrb[2].mxu1 %vm653_vm1, %v2297_v1 }
 0x351   : > { %2031 = vmatpush3.bf16.msra.mxu1 %v2030_v63  ;;  %1818 = vmatprep.mubr.msk.f32.mxu1 %vm2578_vm0, %v2576_v0  ;;  %v2073_v63 = vpack.c.bf16 %v932_v62, %v930_v61  ;;  %v1069_v61 = vld [vmem:[#allocation10 + $0xb0] sm:$0xff]  ;;  %v1070_v62 = vld [vmem:[#allocation10 + $0xb8] sm:$0xff] }
 0x352   : > { %2032 = vmatprep.subr.bf16.mxu1 %v2577_v50 }
 0x355   : > { %2034 = vmatpush3.bf16.msra.mxu1 %v2033_v2  ;;  %v937_v2 = vld [vmem:[#allocation8 + $0x2b0] sm:$0xff] }
 0x356   : > { %2060 = vmatprep.subr.bf16.mxu1 %v2059_v37 }
 0x358   : > { %1819 = vmatmul.mubr.msk.f32.vlgmr.msra.gmra.mrb[4].mxu1 %vm653_vm1, %v2297_v1  ;;  %v935_v1 = vld [vmem:[#allocation8 + $0x268] sm:$0xff] }
 0x359   : > { %1022 = vmatprep.mubr.f32.mxu1 %v2576_v0  ;;  %2062 = vmatpush1.bf16.msra.mxu1 %v2061_v42  ;;  %v2075_v3 = vpack.c.bf16 %v937_v2, %v935_v1  ;;  %v1063_v42 = vld [vmem:[#allocation10 + $0x80] sm:$0xff]  ;;  %v1053_v1 = vld [vmem:[#allocation10 + $0x30] sm:$0xff]  ;;  %v1054_v2 = vld [vmem:[#allocation10 + $0x38] sm:$0xff] }
 0x35a   : > { %2064 = vmatprep.subr.bf16.mxu1 %v2063_v43  ;;  %v1064_v43 = vld [vmem:[#allocation10 + $0x88] sm:$0xff] }
 0x35b   : > { %v2091_v44 = vpack.c.bf16 %v1064_v43, %v1063_v42 }
 0x35d   : > { %2066 = vmatpush1.bf16.msra.mxu1 %v2065_v48  ;;  %2092 = vmatprep.subr.bf16.mxu0 %v2091_v44  ;;  %v1065_v48 = vld [vmem:[#allocation10 + $0x90] sm:$0xff] }
 0x35e   : > { %2068 = vmatprep.subr.bf16.mxu1 %v2067_v51  ;;  %v1066_v51 = vld [vmem:[#allocation10 + $0x98] sm:$0xff] }
 0x423   : > { %v729_v21 = vpop.f32.mrb[2].mxu1 }
 0x424   : > { %v1809_v22 = vpop.f32.mrb[3].mxu1 }
 0x425   : > { %v949_v22 = vld [vmem:[#allocation8 + $0x460] sm:$0xff] }
 0x42b   : > { %v799_v23 = vpop.f32.mrb[4].mxu1 }
 0x42c   : > { %2298 = vrcp.f32 %v799_v23  ;;  %v1820_v24 = vpop.f32.mrb[5].mxu1  ;;  %v2085_v23 = vpack.c.bf16 %v944_v20, %v942_v19  ;;  %v1076_v19 = vld [vmem:[#allocation10 + $0xe8] sm:$0xff] }
 0x436   : > { %v2299_v25 = vpop.eup %2298 }
 0x437   : > { %v804_v26 = vmul.f32 %v2299_v25, %v729_v21  ;;  %v947_v21 = vld [vmem:[#allocation8 + $0x418] sm:$0xff]  ;;  %v946_v25 = vld [vmem:[#allocation8 + $0x410] sm:$0xff] }
 0x438   : > { %v2087_v24 = vpack.c.bf16 %v949_v22, %v947_v21  ;;  %v1059_v22 = vld [vmem:[#allocation10 + $0x60] sm:$0xff] }
 0x439   : > { %1854 = vmatmul.mubr.f32.vlgmr.msra.gmra.mrb[4].mxu0 %v804_v26  ;;  %v948_v26 = vld [vmem:[#allocation8 + $0x458] sm:$0xff] }
 0x43a   : > { %2094 = vmatpush3.bf16.msra.mxu0 %v2093_v47 }
 0x50c   : > { %v891_v30 = vpop.f32.mrb[4].mxu0 }
 0x50d   : > { %v892_v31 = vadd.f32 %v891_v30, %v824_v28  ;;  %v1855_v32 = vpop.f32.mrb[5].mxu0  ;;  %v2089_v28 = vpack.c.bf16 %v948_v26, %v946_v25  ;;  %v1078_v25 = vld [vmem:[#allocation10 + $0xf8] sm:$0xff] }
 0x50f   : > { %v895_v33 = vadd.f32 %v892_v31, %v2896_v49  ;;  %v926_v49 = vld [vmem:[#allocation8 + $0x140] sm:$0xff] }
 0x510   : > { %v2069_v53 = vpack.c.bf16 %v928_v52, %v926_v49  ;;  %v2095_v49 = vpack.c.bf16 %v1066_v51, %v1065_v48  ;;  %v1049_v52 = vld [vmem:[#allocation10 + $0x10] sm:$0xff] }
 0x511   : > { %896 = vadd.xlane.f32.xlu0 %v895_v33 }
 0x512   : > { %2070 = vmatpush1.bf16.msra.mxu1 %v2069_v53  ;;  %v1050_v53 = vld [vmem:[#allocation10 + $0x18] sm:$0xff]  ;;  %2096 = vmatprep.subr.bf16.mxu0 %v2095_v49 }
 0x513   : > { %2072 = vmatprep.subr.bf16.mxu1 %v2071_v60  ;;  %v2101_v60 = vpack.c.bf16 %v1052_v59, %v1051_v58 }
 0x516   : > { %2074 = vmatpush1.bf16.msra.mxu1 %v2073_v63  ;;  %v2103_v63 = vpack.c.bf16 %v1070_v62, %v1069_v61 }
 0x517   : > { %2076 = vmatprep.subr.bf16.mxu1 %v2075_v3  ;;  %v2105_v3 = vpack.c.bf16 %v1054_v2, %v1053_v1 }
 0x51a   : > { %2078 = vmatpush1.bf16.msra.mxu1 %v2077_v6  ;;  %v1055_v6 = vld [vmem:[#allocation10 + $0x40] sm:$0xff] }
 0x51b   : > { %2080 = vmatprep.subr.bf16.mxu1 %v2079_v10  ;;  %v1074_v10 = vld [vmem:[#allocation10 + $0xd8] sm:$0xff]  ;;  %v2109_v11 = vpack.c.bf16 %v1056_v8, %v1055_v6 }
 0x51c   : > { %v2111_v12 = vpack.c.bf16 %v1074_v10, %v1073_v9  ;;  %v1176_v8 = vld [vmem:[#allocation8 + $0x78] sm:$0xff]  ;;  %v1177_v9 = vld [vmem:[#allocation8 + $0xc0] sm:$0xff] }
 0x51e   : > { %2082 = vmatpush1.bf16.msra.mxu1 %v2081_v17  ;;  %v1058_v17 = vld [vmem:[#allocation10 + $0x58] sm:$0xff] }
 0x51f   : > { %2084 = vmatprep.subr.bf16.mxu1 %v2083_v18  ;;  %v1075_v18 = vld [vmem:[#allocation10 + $0xe0] sm:$0xff]  ;;  %v2113_v20 = vpack.c.bf16 %v1058_v17, %v1057_v16  ;;  %v1179_v16 = vld [vmem:[#allocation8 + $0x150] sm:$0xff]  ;;  %v1180_v17 = vld [vmem:[#allocation8 + $0x198] sm:$0xff] }
 0x520   : > { %v2115_v21 = vpack.c.bf16 %v1076_v19, %v1075_v18  ;;  %v2130_v18 = vpack.c.bf16 %v1180_v17, %v1179_v16  ;;  %v1357_v16 = vld [vmem:[#allocation8 + $0x40] sm:$0xff]  ;;  %v1358_v17 = vld [vmem:[#allocation8 + $0x88] sm:$0xff] }
 0x522   : > { %2086 = vmatpush1.bf16.msra.mxu1 %v2085_v23  ;;  %v1060_v23 = vld [vmem:[#allocation10 + $0x68] sm:$0xff] }
 0x523   : > { %2088 = vmatprep.subr.bf16.mxu1 %v2087_v24  ;;  %v1077_v24 = vld [vmem:[#allocation10 + $0xf0] sm:$0xff]  ;;  %v2117_v26 = vpack.c.bf16 %v1060_v23, %v1059_v22  ;;  %v1182_v22 = vld [vmem:[#allocation8 + $0x228] sm:$0xff] }
 0x526   : > { %2090 = vmatpush1.bf16.msra.mxu1 %v2089_v28  ;;  %v2119_v28 = vpack.c.bf16 %v1078_v25, %v1077_v24  ;;  %v1183_v24 = vld [vmem:[#allocation8 + $0x270] sm:$0xff]  ;;  %v1184_v25 = vld [vmem:[#allocation8 + $0x2b8] sm:$0xff] }
 0x527   : > { %2123 = vmatprep.subr.bf16.mxu1 %v2577_v50 }
 0x59e   : > { %v897_v54 = vpop.xlane.xlu0 %896 }
 0x59f   : > { %v899_v55 = vmul.f32 0.0078125, %v897_v54  ;;  %v2097_v54 = vpack.c.bf16 %v1050_v53, %v1049_v52 }
 0x5a1   : > { %v900_v56 = vsub.f32 %v895_v33, %v899_v55  ;;  %v910_v33 = vsub.s32 4, %v2916_v13  ;;  %2098 = vmatpush3.bf16.msra.mxu0 %v2097_v54  ;;  %v1067_v55 = vld [vmem:[#allocation10 + $0xa0] sm:$0xff] }
 0x5a3   : > { %v901_v57 = vmul.f32 %v900_v56, %v900_v56  ;;  %v911_v35 = vrot.slane %v2919_v15, %v910_v33 }
 0x5a5   : > { %902 = vadd.xlane.f32.xlu1 %v901_v57 }
 0x632   : > { %v903_v30 = vpop.xlane.xlu1 %902 }
 0x633   : > { %v904_v31 = vmul.f32 0.0078125, %v903_v30  ;;  %v1061_v30 = vld [vmem:[#allocation10 + $0x70] sm:$0xff] }
 0x635   : > { %v905_v32 = vadd.f32 1e-12, %v904_v31  ;;  %v1062_v31 = vld [vmem:[#allocation10 + $0x78] sm:$0xff] }
 0x637   : > { %2300 = vrsqrt.f32 %v905_v32  ;;  %v2121_v32 = vpack.c.bf16 %v1062_v31, %v1061_v30  ;;  %v1186_v30 = vld [vmem:[#allocation8 + $0x348] sm:$0xff] }
 0x641   : > { %v2301_v36 = vpop.eup %2300 }
 0x642   : > { %v907_v37 = vmul.f32 %v2301_v36, %v900_v56  ;;  %v1068_v56 = vld [vmem:[#allocation10 + $0xa8] sm:$0xff]  ;;  %v953_v36 = vrot.slane %v2919_v15, %v952_v34 }
 0x643   : > { %v2099_v57 = vpack.c.bf16 %v1068_v56, %v1067_v55 }
 0x644   : > { %v912_v39 = vmul.f32 %v911_v35, %v907_v37  ;;  %v364_v35 = vld [vmem:[#allocation11 + $0x8] sm:$0xff] }
 0x645   : > { %2100 = vmatprep.subr.bf16.mxu0 %v2099_v57  ;;  %v957_v37 = vrot.slane %v364_v35, %v952_v34  ;;  %v1188_v34 = vld [vmem:[#allocation8 + $0x3d8] sm:$0xff] }
 0x646   : > { %v2976_v41 = vadd.f32 %v916_v38, %v912_v39  ;;  %2102 = vmatpush3.bf16.msra.mxu0 %v2101_v60 }
 0x647   : > { %2104 = vmatprep.subr.bf16.mxu0 %v2103_v63  ;;  %v1081_v63 = vsub.s32 7, %v2916_v13 }
 0x648   : > { %1023 = vmatmul.mubr.f32.vlgmr.msra.gmra.mrb[6].mxu1 %v2976_v41 }
 0x649   : > { %1888 = vmatprep.mubr.msk.f32.mxu1 %vm2578_vm0, %v2576_v0  ;;  %v1082_v2 = vrot.slane %v2919_v15, %v1081_v63 }
 0x64a   : > { %2106 = vmatpush3.bf16.msra.mxu0 %v2105_v3 }
 0x64b   : > { %2108 = vmatprep.subr.bf16.mxu0 %v2107_v7  ;;  %v1175_v7 = vld [vmem:[#allocation8 + $0x30] sm:$0xff] }
 0x64c   : > { %v2124_v10 = vpack.c.bf16 %v1176_v8, %v1175_v7 }
 0x64e   : > { %2110 = vmatpush3.bf16.msra.mxu0 %v2109_v11  ;;  %v1178_v11 = vld [vmem:[#allocation8 + $0x108] sm:$0xff]  ;;  %2125 = vmatpush3.bf16.msra.mxu1 %v2124_v10 }
 0x64f   : > { %2112 = vmatprep.subr.bf16.mxu0 %v2111_v12  ;;  %v2127_v12 = vpack.c.bf16 %v1178_v11, %v1177_v9  ;;  %2126 = vmatprep.subr.bf16.mxu1 %v2577_v50  ;;  %v1280_v10 = vld [vmem:[#allocation8 + $0x428] sm:$0xff]  ;;  %v1281_v11 = vld [vmem:[#allocation8 + $0x470] sm:$0xff] }
 0x652   : > { %2114 = vmatpush3.bf16.msra.mxu0 %v2113_v20  ;;  %2128 = vmatpush3.bf16.msra.mxu1 %v2127_v12  ;;  %v2169_v12 = vpack.c.bf16 %v1281_v11, %v1280_v10 }
 0x653   : > { %2116 = vmatprep.subr.bf16.mxu0 %v2115_v21  ;;  %2129 = vmatprep.subr.bf16.mxu1 %v2577_v50  ;;  %v1181_v21 = vld [vmem:[#allocation8 + $0x1e0] sm:$0xff] }
 0x654   : > { %v2133_v23 = vpack.c.bf16 %v1182_v22, %v1181_v21  ;;  %v1364_v21 = vld [vmem:[#allocation8 + $0x238] sm:$0xff] }
 0x656   : > { %2118 = vmatpush3.bf16.msra.mxu0 %v2117_v26  ;;  %2131 = vmatpush3.bf16.msra.mxu1 %v2130_v18  ;;  %v2136_v26 = vpack.c.bf16 %v1184_v25, %v1183_v24  ;;  %v2172_v18 = vpack.c.bf16 %v1358_v17, %v1357_v16  ;;  %v1366_v24 = vld [vmem:[#allocation8 + $0x2c8] sm:$0xff] }
 0x657   : > { %2120 = vmatprep.subr.bf16.mxu0 %v2119_v28  ;;  %2132 = vmatprep.subr.bf16.mxu1 %v2577_v50  ;;  %v1185_v28 = vld [vmem:[#allocation8 + $0x300] sm:$0xff] }
 0x658   : > { %v2139_v31 = vpack.c.bf16 %v1186_v30, %v1185_v28  ;;  %v1368_v28 = vld [vmem:[#allocation8 + $0x358] sm:$0xff] }
 0x65a   : > { %2122 = vmatpush3.bf16.msra.mxu0 %v2121_v32  ;;  %2134 = vmatpush3.bf16.msra.mxu1 %v2133_v23  ;;  %v1187_v32 = vld [vmem:[#allocation8 + $0x390] sm:$0xff]  ;;  %v1365_v23 = vld [vmem:[#allocation8 + $0x280] sm:$0xff] }
 0x65b   : > { %2147 = vmatprep.subr.bf16.mxu0 %v2577_v50  ;;  %2135 = vmatprep.subr.bf16.mxu1 %v2577_v50  ;;  %v2142_v35 = vpack.c.bf16 %v1188_v34, %v1187_v32  ;;  %v2184_v25 = vpack.c.bf16 %v1366_v24, %v1365_v23  ;;  %v1370_v32 = vld [vmem:[#allocation8 + $0x3e8] sm:$0xff] }
 0x65e   : > { %2137 = vmatpush3.bf16.msra.mxu1 %v2136_v26  ;;  %v1367_v26 = vld [vmem:[#allocation8 + $0x310] sm:$0xff] }
 0x65f   : > { %2138 = vmatprep.subr.bf16.mxu1 %v2577_v50  ;;  %v2187_v30 = vpack.c.bf16 %v1368_v28, %v1367_v26 }
 0x662   : > { %2140 = vmatpush3.bf16.msra.mxu1 %v2139_v31  ;;  %v1369_v31 = vld [vmem:[#allocation8 + $0x3a0] sm:$0xff] }
 0x663   : > { %2141 = vmatprep.subr.bf16.mxu1 %v2577_v50  ;;  %v2190_v34 = vpack.c.bf16 %v1370_v32, %v1369_v31 }
 0x666   : > { %2143 = vmatpush3.bf16.msra.mxu1 %v2142_v35 }
 0x667   : > { %2144 = vmatprep.subr.bf16.mxu1 %v2577_v50 }
 0x71b   : > { %v1024_v38 = vpop.f32.mrb[6].mxu1 }
 0x71c   : > { %v1025_v39 = vadd.f32 %v1024_v38, %v953_v36  ;;  %v1026_v42 = vpop.f32.mrb[7].mxu1  ;;  %v1189_v36 = vld [vmem:[#allocation8 + $0x420] sm:$0xff] }
 0x71d   : > { %v1027_v43 = vadd.f32 %v1026_v42, %v957_v37  ;;  %v1190_v37 = vld [vmem:[#allocation8 + $0x468] sm:$0xff]  ;;  %v1267_v42 = vld [vmem:[#allocation8 + $0x80] sm:$0xff] }
 0x71e   : > { %v1029_v44 = vmul.f32 %v1025_v39, %v1025_v39  ;;  %v2145_v38 = vpack.c.bf16 %v1190_v37, %v1189_v36 }
 0x71f   : > { %v1030_v45 = vmul.f32 %v1027_v43, %v1027_v43 }
 0x720   : > { %v1031_v46 = vmul.f32 %v1029_v44, %v1025_v39  ;;  %2146 = vmatpush3.bf16.msra.mxu1 %v2145_v38 }
 0x721   : > { %v1032_v47 = vmul.f32 %v1030_v45, %v1027_v43  ;;  %2171 = vmatprep.subr.bf16.mxu1 %v2577_v50  ;;  %v1269_v45 = vld [vmem:[#allocation8 + $0x110] sm:$0xff] }
 0x722   : > { %v1033_v48 = vmul.f32 0.044715, %v1031_v46 }
 0x723   : > { %v1034_v51 = vmul.f32 0.044715, %v1032_v47  ;;  %v1270_v47 = vld [vmem:[#allocation8 + $0x158] sm:$0xff] }
 0x724   : > { %v1035_v49 = vadd.f32 %v1033_v48, %v1025_v39  ;;  %v1271_v48 = vld [vmem:[#allocation8 + $0x1a0] sm:$0xff] }
 0x725   : > { %v1036_v52 = vadd.f32 %v1034_v51, %v1027_v43  ;;  %v2154_v51 = vpack.c.bf16 %v1271_v48, %v1270_v47 }
 0x726   : > { %v1037_v53 = vmul.f32 0.7978846, %v1035_v49  ;;  %v1272_v49 = vld [vmem:[#allocation8 + $0x1e8] sm:$0xff] }
 0x727   : > { %v1038_v54 = vmul.f32 0.7978846, %v1036_v52  ;;  %v1273_v52 = vld [vmem:[#allocation8 + $0x230] sm:$0xff] }
 0x728   : > { %2302 = vtanh.f32 %v1037_v53  ;;  %v2157_v53 = vpack.c.bf16 %v1273_v52, %v1272_v49 }
 0x729   : > { %2304 = vtanh.f32 %v1038_v54  ;;  %v1274_v54 = vld [vmem:[#allocation8 + $0x278] sm:$0xff] }
 0x732   : > { %v2303_v55 = vpop.eup %2302 }
 0x733   : > { %v2305_v56 = vpop.eup %2304  ;;  %v1041_v57 = vadd.f32 1.0, %v2303_v55  ;;  %v1275_v55 = vld [vmem:[#allocation8 + $0x2c0] sm:$0xff] }
 0x734   : > { %v1042_v58 = vadd.f32 1.0, %v2305_v56  ;;  %v2160_v56 = vpack.c.bf16 %v1275_v55, %v1274_v54 }
 0x735   : > { %v1043_v59 = vmul.f32 0.5, %v1041_v57  ;;  %v1276_v57 = vld [vmem:[#allocation8 + $0x308] sm:$0xff] }
 0x736   : > { %v1044_v60 = vmul.f32 0.5, %v1042_v58  ;;  %v1277_v58 = vld [vmem:[#allocation8 + $0x350] sm:$0xff] }
 0x737   : > { %v1045_v62 = vmul.f32 %v1043_v59, %v1025_v39  ;;  %v1266_v39 = vld [vmem:[#allocation8 + $0x38] sm:$0xff]  ;;  %v2163_v59 = vpack.c.bf16 %v1277_v58, %v1276_v57 }
 0x738   : > { %v1046_v61 = vmul.f32 %v1044_v60, %v1027_v43  ;;  %v1268_v43 = vld [vmem:[#allocation8 + $0xc8] sm:$0xff]  ;;  %v2148_v44 = vpack.c.bf16 %v1267_v42, %v1266_v39  ;;  %v1278_v60 = vld [vmem:[#allocation8 + $0x398] sm:$0xff]  ;;  %v1371_v42 = vld [vmem:[#allocation8 + $0x430] sm:$0xff] }
 0x739   : > { %v2151_v46 = vpack.c.bf16 %v1269_v45, %v1268_v43  ;;  %v1372_v43 = vld [vmem:[#allocation8 + $0x478] sm:$0xff] }
 0x73a   : > { %1147 = vmatprep.mubr.f32.mxu0 %v1046_v61  ;;  %v1279_v61 = vld [vmem:[#allocation8 + $0x3e0] sm:$0xff] }
 0x73b   : > { %1148 = vmatmul.mubr.f32.vlgmr.msra.gmra.mrb[6].mxu0 %v1045_v62  ;;  %v2166_v62 = vpack.c.bf16 %v1279_v61, %v1278_v60 }
 0x73c   : > { %1923 = vmatprep.mubr.msk.f32.mxu0 %vm2578_vm0, %v2576_v0  ;;  %2149 = vmatpush3.bf16.msra.mxu0 %v2148_v44  ;;  %v2193_v44 = vpack.c.bf16 %v1372_v43, %v1371_v42 }
 0x73d   : > { %2150 = vmatprep.subr.bf16.mxu0 %v2577_v50 }
 0x740   : > { %2152 = vmatpush3.bf16.msra.mxu0 %v2151_v46 }
 0x741   : > { %2153 = vmatprep.subr.bf16.mxu0 %v2577_v50 }
 0x744   : > { %2155 = vmatpush3.bf16.msra.mxu0 %v2154_v51 }
 0x745   : > { %2156 = vmatprep.subr.bf16.mxu0 %v2577_v50 }
 0x748   : > { %2158 = vmatpush3.bf16.msra.mxu0 %v2157_v53 }
 0x749   : > { %2159 = vmatprep.subr.bf16.mxu0 %v2577_v50 }
 0x74c   : > { %2161 = vmatpush3.bf16.msra.mxu0 %v2160_v56 }
 0x74d   : > { %2162 = vmatprep.subr.bf16.mxu0 %v2577_v50 }
 0x750   : > { %2164 = vmatpush3.bf16.msra.mxu0 %v2163_v59 }
 0x751   : > { %2165 = vmatprep.subr.bf16.mxu0 %v2577_v50 }
 0x754   : > { %2167 = vmatpush3.bf16.msra.mxu0 %v2166_v62 }
 0x755   : > { %2168 = vmatprep.subr.bf16.mxu0 %v2577_v50 }
 0x758   : > { %2170 = vmatpush3.bf16.msra.mxu0 %v2169_v12 }
 0x80e   : > { %v1699_v1 = vpop.f32.mrb[6].mxu0 }
 0x80f   : > { %v1700_v3 = vpop.f32.mrb[7].mxu0 }
 0x810   : > { %v1701_v4 = vadd.f32 %v1700_v3, %v1699_v1  ;;  %v3008_v3 = vld [vmem:[#allocation11 + $0x10] sm:$0xff] }
 0x811   : > { %v1194_v35 = vrot.slane %v3008_v3, %v571_v40  ;;  %v1285_v45 = vrot.slane %v3008_v3, %v823_v27  ;;  %v1376_v48 = vrot.slane %v3008_v3, %v910_v33 }
 0x812   : > { %v1150_v5 = vadd.f32 %v1701_v4, %v1082_v2  ;;  %v1168_v4 = vrot.slane %v3008_v3, %v561_v29  ;;  %v1359_v29 = vld [vmem:[#allocation8 + $0xd0] sm:$0xff] }
 0x814   : > { %v1153_v6 = vadd.f32 %v1150_v5, %v2976_v41 }
 0x816   : > { %1154 = vadd.xlane.f32.xlu1 %v1153_v6 }
 0x8a3   : > { %v1155_v15 = vpop.xlane.xlu1 %1154 }
 0x8a4   : > { %v1156_v41 = vmul.f32 0.0078125, %v1155_v15  ;;  %v1360_v15 = vld [vmem:[#allocation8 + $0x118] sm:$0xff] }
 0x8a6   : > { %v2992_v19 = vsub.f32 %v1153_v6, %v1156_v41  ;;  %v1173_v6 = vrot.slane %v3008_v3, %v566_v14  ;;  %v2175_v41 = vpack.c.bf16 %v1360_v15, %v1359_v29  ;;  %v1361_v14 = vld [vmem:[#allocation8 + $0x160] sm:$0xff] }
 0x8a8   : > { %v1158_v20 = vmul.f32 %v2992_v19, %v2992_v19 }
 0x8aa   : > { %1159 = vadd.xlane.f32.xlu0 %v1158_v20 }
 0x937   : > { %v1160_v63 = vpop.xlane.xlu0 %1159 }
 0x938   : > { %v1161_v1 = vmul.f32 0.0078125, %v1160_v63 }
 0x93a   : > { %v1162_v2 = vadd.f32 1e-12, %v1161_v1 }
 0x93c   : > { %2306 = vrsqrt.f32 %v1162_v2 }
 0x946   : > { %v2307_v5 = vpop.eup %2306 }
 0x947   : > { %v1164_v7 = vmul.f32 %v2307_v5, %v2992_v19  ;;  %v1362_v19 = vld [vmem:[#allocation8 + $0x1a8] sm:$0xff] }
 0x948   : > { %v2178_v20 = vpack.c.bf16 %v1362_v19, %v1361_v14 }
 0x949   : > { %v1169_v8 = vmul.f32 %v1168_v4, %v1164_v7 }
 0x94b   : > { %v1174_v9 = vadd.f32 %v1173_v6, %v1169_v8 }
 0x94d   : > { %1889 = vmatmul.mubr.f32.vlgmr.msra.gmra.mrb[8].mxu1 %v1174_v9 }
 0x94e   : > { %1958 = vmatprep.mubr.msk.f32.mxu1 %vm2578_vm0, %v2576_v0  ;;  %2173 = vmatpush3.bf16.msra.mxu1 %v2172_v18  ;;  %v1363_v0 = vld [vmem:[#allocation8 + $0x1f0] sm:$0xff] }
 0x94f   : > { %2174 = vmatprep.subr.bf16.mxu1 %v2577_v50  ;;  %v2181_v22 = vpack.c.bf16 %v1364_v21, %v1363_v0 }
 0x952   : > { %2176 = vmatpush3.bf16.msra.mxu1 %v2175_v41 }
 0x953   : > { %2177 = vmatprep.subr.bf16.mxu1 %v2577_v50 }
 0x956   : > { %2179 = vmatpush3.bf16.msra.mxu1 %v2178_v20 }
 0x957   : > { %2180 = vmatprep.subr.bf16.mxu1 %v2577_v50 }
 0x95a   : > { %2182 = vmatpush3.bf16.msra.mxu1 %v2181_v22 }
 0x95b   : > { %2183 = vmatprep.subr.bf16.mxu1 %v2577_v50 }
 0x95e   : > { %2185 = vmatpush3.bf16.msra.mxu1 %v2184_v25 }
 0x95f   : > { %2186 = vmatprep.subr.bf16.mxu1 %v2577_v50 }
 0x962   : > { %2188 = vmatpush3.bf16.msra.mxu1 %v2187_v30 }
 0x963   : > { %2189 = vmatprep.subr.bf16.mxu1 %v2577_v50 }
 0x966   : > { %2191 = vmatpush3.bf16.msra.mxu1 %v2190_v34 }
 0x967   : > { %2192 = vmatprep.subr.bf16.mxu1 %v2577_v50 }
 0x96a   : > { %2194 = vmatpush3.bf16.msra.mxu1 %v2193_v44 }
 0xa20   : > { %v1261_v36 = vpop.f32.mrb[8].mxu1 }
 0xa21   : > { %v1262_v37 = vadd.f32 %v1261_v36, %v1194_v35  ;;  %v1890_v38 = vpop.f32.mrb[9].mxu1 }
 0xa23   : > { %v1265_v39 = vmax.f32 %v1262_v37, 0.0 }
 0xa25   : > { %1924 = vmatmul.mubr.f32.vlgmr.msra.gmra.mrb[8].mxu0 %v1265_v39 }
 0xaf8   : > { %v1352_v50 = vpop.f32.mrb[8].mxu0 }
 0xaf9   : > { %v1353_v46 = vadd.f32 %v1352_v50, %v1285_v45  ;;  %v1925_v47 = vpop.f32.mrb[9].mxu0 }
 0xafb   : > { %v1356_v40 = vmax.f32 %v1353_v46, 0.0 }
 0xafd   : > { %1959 = vmatmul.mubr.f32.vlgmr.msra.gmra.mrb[10].mxu1 %v1356_v40 }
 0xbd0   : > { %v1443_v51 = vpop.f32.mrb[10].mxu1 }
 0xbd1   : > { %v1444_v49 = vadd.f32 %v1443_v51, %v1376_v48  ;;  %v1960_v52 = vpop.f32.mrb[11].mxu1 }
 0xbd3   : > { %1447 = vst [vmem:[%s361_s3] sm:$0xff] %v1444_v49 }
 0xbd4   : > { %2493 = shalt.err (!%p2490_p6)
}
 0xbd5   : > { %s2494_s14 = scalar_lea.hbm %s3040_s17, 128  ;;  %s2498_s15 = scalar_lea.hbm %s3090_s6, 256 }
 0xbd6   : > { %p2495_p4 = scmp.ne.s32.totalorder %s3040_s17, %s2494_s14  ;;  %p2499_p10 = scmp.lt.u32.totalorder %s3040_s17, %s3090_s6 }
 0xbd7   : > { %p2500_p1 = scmp.lt.u32.totalorder %s2498_s15, %s2494_s14  ;;  %p2502_p12 = scmp.lt.u32.totalorder %s2494_s14, %s3040_s17 }
 0xbd8   : > { %p2496_p8 = pnand %p2495_p4, %p3118_p13 }
 0xbd9   : > { %p2501_p11 = por %p2500_p1, %p2499_p10 }
 0xbda   : > { %p2497_p5 = pneg %p2496_p8 }
 0xbdb   : > { %p2503_p7 = por %p2502_p12, %p2501_p11 }
 0xbdd   : > { %p2504_p9 = pnand %p2503_p7, %p2497_p5 }
 0xbdf   : > { %2507 = shalt.err (!%p2504_p9)
}
 0xbe0   : > { %2215 = dma.vmem_to_hbm [thread:$0]  (%p3118_p13), %s3042_s7, 128, %s3040_s17, %s1449_s4  }
 0xbe1 PF: > { %s1474_s16 = sand.u32 1, %s2550_s21   ;;  %p3119_p0 = scmp.ne.s32.totalorder %s3108_s11, 0 }
 0xbe2   : > { %p3120_p2 = scmp.ge.s32.totalorder %s2562_s24, 2  ;;  %s1475_s18 = scalar_lea.sflag [#allocation4], %s1474_s16 }
 0xbe4   : > { %p2238_p3 = pnand %p3120_p2, %p3119_p0 }
 0xbe6   : > { %2545 = dma.done.wait (!%p2238_p3), %s1475_s18, 128  }
 0xbe7   : > { %2547 = vsyncadd (!%p2238_p3), %s1475_s18, 4294967168  ;;  %p24_p6 = scmp.ge.s32.totalorder %s2757_s30, 4   ;;  %s3121_s21 = smov %s2554_s22 }
 0xbe8   : > { %s3122_s22 = smov %s2558_s23  ;;  %s3123_s23 = smov %s2768_s29 }
 0xbe9   : > { %s3124_s24 = smov %s2757_s30  ;;  %26 = sbr.rel (!%p24_p6) target bundleno = 13 (0xd), region = 118 }
 0xbf0   :  { %1480 = vsyncpa [#allocation3], 1 }
 0xbf1   :  { %1482 = vsyncpa [#allocation3 + $0x1], 1 }
 0xbf2   :  { %1483 = vsyncpa [#allocation6], 1 }
 0xbf3   :  { %1485 = vsyncpa [#allocation6 + $0x1], 1 }
 0xbf4   :  { %1486 = vsyncpa [#allocation9], 1 }
 0xbf5   :  { %1487 = vsyncpa [#allocation12], 1 }
 0xbf6   :  { %1488 = vsyncpa [#allocation4], 1 }
 0xbf7   :  { %1490 = vsyncpa [#allocation4 + $0x1], 1 }

</bundles_post_ra>
